<compile_context>
chip_gen: v5e
topology: v5e:2x2
jax: 0.10.0
libtpu: 0.0.40
codegen_flags: <defaults>
</compile_context>

<pallas_src>
import jax
import jax.numpy as jnp
from jax.experimental import pallas as pl
from jax.experimental.pallas import tpu as pltpu

B = 2                  # demo batch
S = 16                 # spatial (4 x 4)
C_OUT = 100            # conv output channels
HID = C_OUT * S        # 1600
K_PAD = 1664           # 13 * 128 (padded contraction dim)
N_CLS = 169


def pet_kernel(x_ref, slab_ref, fw_ref, o_ref):
    # x_ref   : (TM, 16)        f32  -- flattened spatial input (s = h*4 + w)
    # slab_ref: (18, K_PAD)     f32  -- rows 0..15: conv-replication matrix Rw
    #                                   row  16  : conv bias expanded to flat layout
    #                                   row  17  : fc bias (first 169 lanes used)
    # fw_ref  : (K_PAD, N_CLS)  bf16 -- fc weight, transposed, K zero-padded
    # o_ref   : (TM, N_CLS)     f32  -- softmax probabilities
    x = x_ref[...]                                                   # (TM, 16)
    rw = slab_ref[0:S, :]                                            # (16, K_PAD)
    cb = slab_ref[S:S + 1, :]                                        # (1, K_PAD)
    fb = slab_ref[S + 1:S + 2, 0:N_CLS]                              # (1, N_CLS)

    # Conv2d(1,100,1) + NCHW flatten, done as a tiny MXU matmul:
    #   (x @ Rw)[b, c*16+s] = x[b, s] * conv_w[c]
    h = jnp.dot(x, rw, preferred_element_type=jnp.float32) + cb      # (TM, K_PAD)
    h = jnp.maximum(h, 0.0)                                          # ReLU

    # Linear(1600 -> 169): bf16 MXU matmul with f32 accumulation.
    logits = jnp.dot(h.astype(jnp.bfloat16), fw_ref[...],
                     preferred_element_type=jnp.float32) + fb        # (TM, N_CLS)

    # Max-stabilized softmax with exact normalization (rows sum to 1 in f32).
    m = jnp.max(logits, axis=-1, keepdims=True)
    e = jnp.exp(logits - m)
    o_ref[...] = e / jnp.sum(e, axis=-1, keepdims=True)


def prepare_params(conv_w, conv_b, fc_w, fc_b):
    """One-time parameter preparation (do NOT redo per inference call)."""
    conv_w = conv_w.reshape(C_OUT).astype(jnp.float32)               # (100,)
    conv_b = conv_b.reshape(C_OUT).astype(jnp.float32)               # (100,)

    # Replication matrix with the conv weight folded in:
    #   Rw[s', c*16+s] = conv_w[c] if s' == s else 0
    eye = jnp.eye(S, dtype=jnp.float32)                              # (16, 16)
    rw = (eye[:, None, :] * conv_w[None, :, None]).reshape(S, HID)   # (16, 1600)
    k_extra = K_PAD - HID
    rw = jnp.pad(rw, ((0, 0), (0, k_extra)))                         # (16, 1664)

    # Conv bias in the flattened c-major layout (k = c*16 + s).
    cb_full = jnp.pad(jnp.repeat(conv_b, S), (0, k_extra))           # (1664,)
    # fc bias, zero-padded out to the slab width (only first 169 lanes are read).
    fb_row = jnp.pad(fc_b.astype(jnp.float32), (0, K_PAD - N_CLS))   # (1664,)

    slab = jnp.concatenate([rw, cb_full[None, :], fb_row[None, :]], axis=0)  # (18, 1664) f32

    # fc weight (169, 1600) -> W.T, K zero-padded, stored bf16 (halves HBM traffic).
    fw = jnp.pad(fc_w.T.astype(jnp.float32),
                 ((0, k_extra), (0, 0))).astype(jnp.bfloat16)        # (1664, 169) bf16
    return slab, fw


def _cost(rows):
    return pl.CostEstimate(
        flops=2 * rows * S * K_PAD + 2 * rows * K_PAD * N_CLS + 3 * rows * K_PAD,
        transcendentals=rows * N_CLS,
        bytes_accessed=4 * rows * S + 4 * (S + 2) * K_PAD
        + 2 * K_PAD * N_CLS + 4 * rows * N_CLS,
    )


def pet_forward(x_nchw, params, tm=256):
    """x_nchw: (B, 1, 4, 4) float32. Returns (B, 169) softmax probabilities."""
    slab, fw = params
    b = x_nchw.shape[0]
    x_flat = x_nchw.reshape(b, S).astype(jnp.float32)                # (B, 16)

    if b <= tm:
        # Gridless path for small/latency batches: whole arrays resident in VMEM.
        vmem = pl.BlockSpec(memory_space=pltpu.MemorySpace.VMEM)
        return pl.pallas_call(
            pet_kernel,
            out_shape=jax.ShapeDtypeStruct((b, N_CLS), jnp.float32),
            in_specs=[vmem, vmem, vmem],
            out_specs=vmem,
            cost_estimate=_cost(b),
        )(x_flat, slab, fw)

    # Batched path: tile the batch, keep the weights resident (index-invariant
    # specs), and mark the batch axis parallel so v7x's two TCs can split it.
    b_pad = ((b + tm - 1) // tm) * tm
    if b_pad != b:
        x_flat = jnp.pad(x_flat, ((0, b_pad - b), (0, 0)))
    out = pl.pallas_call(
        pet_kernel,
        out_shape=jax.ShapeDtypeStruct((b_pad, N_CLS), jnp.float32),
        grid=(b_pad // tm,),
        in_specs=[
            pl.BlockSpec((tm, S), lambda i: (i, 0)),
            pl.BlockSpec((S + 2, K_PAD), lambda i: (0, 0)),
            pl.BlockSpec((K_PAD, N_CLS), lambda i: (0, 0)),
        ],
        out_specs=pl.BlockSpec((tm, N_CLS), lambda i: (i, 0)),
        compiler_params=pltpu.CompilerParams(dimension_semantics=("parallel",)),
        cost_estimate=_cost(b_pad),
    )(x_flat, slab, fw)
    return out[:b]


def reference_forward(x_nchw, conv_w, conv_b, fc_w, fc_b):
    """Pure-JAX f32 reference mirroring the PyTorch module."""
    b = x_nchw.shape[0]
    y = x_nchw[:, 0][:, None, :, :] * conv_w[None, :, None, None] \
        + conv_b[None, :, None, None]                                # (B, 100, 4, 4)
    y = jnp.maximum(y, 0.0)
    y = y.reshape(b, HID)                                            # NCHW flatten
    logits = y @ fc_w.T + fc_b
    return jax.nn.softmax(logits, axis=1)


if __name__ == "__main__":
    key = jax.random.PRNGKey(0)
    k_x, k_cw, k_cb, k_fw, k_fb, k_x2 = jax.random.split(key, 6)

    # Shapes match nn.Conv2d(1, 100, 1) and nn.Linear(1600, 169).
    x = jax.random.normal(k_x, (B, 1, 4, 4), dtype=jnp.float32)
    conv_w = jax.random.normal(k_cw, (C_OUT, 1, 1, 1), dtype=jnp.float32) * 0.1
    conv_b = jax.random.normal(k_cb, (C_OUT,), dtype=jnp.float32) * 0.1
    fc_w = jax.random.normal(k_fw, (N_CLS, HID), dtype=jnp.float32) * 0.02
    fc_b = jax.random.normal(k_fb, (N_CLS,), dtype=jnp.float32) * 0.02

    # Prepare (fold / pad / transpose / cast) the weights once, outside the hot path.
    params = jax.tree_util.tree_map(jax.block_until_ready,
                                    prepare_params(conv_w, conv_b, fc_w, fc_b))

    # Small-batch (gridless) path.
    out = jax.block_until_ready(pet_forward(x, params))
    ref = reference_forward(x, conv_w.reshape(-1), conv_b, fc_w, fc_b)
    assert out.shape == (B, N_CLS)
    # bf16 fc-weight storage -> slightly looser elementwise tolerance vs f32 reference.
    assert jnp.allclose(out, ref, atol=5e-4, rtol=5e-3), "mismatch vs reference"
    # Exact-division softmax: rows sum to 1 to f32 precision.
    assert jnp.allclose(jnp.sum(out, axis=1), 1.0, atol=1e-3), "softmax rows must sum to 1"

    # Exercise the batched (gridded, batch-parallel) path with a tiny tile.
    xb = jax.random.normal(k_x2, (16, 1, 4, 4), dtype=jnp.float32)
    outb = jax.block_until_ready(pet_forward(xb, params, tm=8))
    refb = reference_forward(xb, conv_w.reshape(-1), conv_b, fc_w, fc_b)
    assert outb.shape == (16, N_CLS)
    assert jnp.allclose(outb, refb, atol=5e-4, rtol=5e-3), "batched path mismatch"
    assert jnp.allclose(jnp.sum(outb, axis=1), 1.0, atol=1e-3), "batched softmax rows must sum to 1"

    print("KERNEL_OK")
</pallas_src>

<mosaic_0001>
module attributes {stable_mosaic.version = 11 : i64} {
  func.func @pet_kernel(%arg0: memref<2x16xf32, #tpu.memory_space<vmem>>, %arg1: memref<18x1664xf32, #tpu.memory_space<vmem>>, %arg2: memref<1664x169xbf16, #tpu.memory_space<vmem>>, %arg3: memref<2x169xf32, #tpu.memory_space<vmem>>) attributes {dimension_semantics = [], scalar_prefetch = 0 : i64, scratch_operands = 0 : i64, tpu.core_type = #tpu.core_type<tc>} {
    %c0 = arith.constant 0 : index
    %c0_0 = arith.constant 0 : index
    %0 = vector.load %arg0[%c0, %c0_0] : memref<2x16xf32, #tpu.memory_space<vmem>>, vector<2x16xf32>
    %c0_1 = arith.constant 0 : index
    %c0_2 = arith.constant 0 : index
    %1 = vector.load %arg1[%c0_1, %c0_2] : memref<18x1664xf32, #tpu.memory_space<vmem>>, vector<16x1664xf32>
    %c16 = arith.constant 16 : index
    %c0_3 = arith.constant 0 : index
    %2 = vector.load %arg1[%c16, %c0_3] : memref<18x1664xf32, #tpu.memory_space<vmem>>, vector<1x1664xf32>
    %c17 = arith.constant 17 : index
    %c0_4 = arith.constant 0 : index
    %3 = vector.load %arg1[%c17, %c0_4] : memref<18x1664xf32, #tpu.memory_space<vmem>>, vector<1x169xf32>
    %cst = arith.constant dense<0.000000e+00> : vector<2x1664xf32>
    %4 = tpu.matmul %0, %1, %cst {dimension_numbers = #tpu.dot_dimension_numbers<[1], [0], [0], [1], [0, 0, 1, 1], [], []>} : vector<2x16xf32>, vector<16x1664xf32>, vector<2x1664xf32> -> vector<2x1664xf32>
    %5 = vector.broadcast %2 : vector<1x1664xf32> to vector<2x1664xf32>
    %6 = arith.addf %4, %5 : vector<2x1664xf32>
    %cst_5 = arith.constant 0.000000e+00 : f32
    %7 = vector.broadcast %cst_5 : f32 to vector<2x1664xf32>
    %8 = arith.maximumf %6, %7 : vector<2x1664xf32>
    %9 = arith.truncf %8 : vector<2x1664xf32> to vector<2x1664xbf16>
    %c0_6 = arith.constant 0 : index
    %c0_7 = arith.constant 0 : index
    %10 = vector.load %arg2[%c0_6, %c0_7] : memref<1664x169xbf16, #tpu.memory_space<vmem>>, vector<1664x169xbf16>
    %cst_8 = arith.constant dense<0.000000e+00> : vector<2x169xf32>
    %11 = tpu.matmul %9, %10, %cst_8 {dimension_numbers = #tpu.dot_dimension_numbers<[1], [0], [0], [1], [0, 0, 1, 1], [], []>} : vector<2x1664xbf16>, vector<1664x169xbf16>, vector<2x169xf32> -> vector<2x169xf32>
    %12 = vector.broadcast %3 : vector<1x169xf32> to vector<2x169xf32>
    %13 = arith.addf %11, %12 : vector<2x169xf32>
    %cst_9 = arith.constant dense<0xFF800000> : vector<2xf32>
    %14 = vector.multi_reduction <maximumf>, %13, %cst_9 [1] : vector<2x169xf32> to vector<2xf32>
    %15 = vector.shape_cast %14 : vector<2xf32> to vector<2x1xf32>
    %16 = vector.broadcast %15 : vector<2x1xf32> to vector<2x169xf32>
    %17 = arith.subf %13, %16 : vector<2x169xf32>
    %18 = math.exp %17 : vector<2x169xf32>
    %cst_10 = arith.constant dense<0.000000e+00> : vector<2xf32>
    %19 = vector.multi_reduction <add>, %18, %cst_10 [1] : vector<2x169xf32> to vector<2xf32>
    %20 = vector.shape_cast %19 : vector<2xf32> to vector<2x1xf32>
    %21 = vector.broadcast %20 : vector<2x1xf32> to vector<2x169xf32>
    %22 = arith.divf %18, %21 : vector<2x169xf32>
    %c0_11 = arith.constant 0 : index
    %c0_12 = arith.constant 0 : index
    %23 = vector.load %arg3[%c0_11, %c0_12] : memref<2x169xf32, #tpu.memory_space<vmem>>, vector<2x169xf32>
    tpu.vector_store %arg3[%c0_11, %c0_12], %22 {strides = array<i32>} : memref<2x169xf32, #tpu.memory_space<vmem>>, vector<2x169xf32>,
    return
  }
}

</mosaic_0001>

<bundles_post_ra>
// kernel: tpu_custom_call.1
= control target key start
LH: loop header
LB: loop body
LE: loop exit
PB: predicated region body
PF: predicated region fallthrough
CT: control target
= control target key end

     0   :  { %vm80_vm0 = vcmask 130048   ;;  %s4585_s0 = inlined_call_operand.vmem [shape: f32[2,16], index: 0, kind: input, shape index: {}]   ;;  %s4586_s1 = inlined_call_operand.vmem [shape: f32[18,1664], index: 1, kind: input, shape index: {}]   ;;  %s4587_s2 = inlined_call_operand.vmem [shape: bf16[1664,169], index: 2, kind: input, shape index: {}]   ;;  %s4588_s3 = inlined_call_operand.hbm [shape: f32[2,169], index: 3, kind: output, shape index: {}]  }
   0x1   :  { %v29_v0 = vld [vmem:[%s4586_s1 + $0x68] sm:$0xff]  ;;  %v30_v1 = vld [vmem:[%s4586_s1 + $0x70] sm:$0xff]  ;;  %v16_v2 = vld [vmem:[%s4586_s1] sm:$0xff] }
   0x2   :  { %98 = vmatpush.msra.mxu0 %v29_v0  ;;  %118 = vmatpush.msra.mxu3 %v30_v1  ;;  %v17_v3 = vld [vmem:[%s4586_s1 + $0x8] sm:$0xff]  ;;  %v3146_v4 = vld [vmem:[%s4585_s0] sm:$0x3]  ;;  %v31_v5 = vld [vmem:[%s4586_s1 + $0x78] sm:$0xff] }
   0x3   :  { %v32_v6 = vld [vmem:[%s4586_s1 + $0x80] sm:$0xff]  ;;  %v18_v7 = vld [vmem:[%s4586_s1 + $0x10] sm:$0xff]  ;;  %v19_v8 = vld [vmem:[%s4586_s1 + $0x18] sm:$0xff] }
   0x4   :  { %99 = vmatpush.msra.mxu0 %v16_v2  ;;  %119 = vmatpush.msra.mxu3 %v17_v3  ;;  %v35_v9 = vld [vmem:[%s4586_s1 + $0x98] sm:$0xff]  ;;  %v34_v10 = vld [vmem:[%s4586_s1 + $0x90] sm:$0xff]  ;;  %v33_v11 = vld [vmem:[%s4586_s1 + $0x88] sm:$0xff] }
   0x5   :  { %2024 = vmatmul.msk.f32.vlgmr.msra.gmra.mxu0 %vm80_vm0, %v3146_v4  ;;  %2025 = vmatmul.msk.f32.vlgmr.msra.gmra.mxu3 %vm80_vm0, %v3146_v4  ;;  %v22_v12 = vld [vmem:[%s4586_s1 + $0x30] sm:$0xff]  ;;  %v21_v13 = vld [vmem:[%s4586_s1 + $0x28] sm:$0xff]  ;;  %v20_v14 = vld [vmem:[%s4586_s1 + $0x20] sm:$0xff] }
   0x6   :  { %138 = vmatpush.msrb.mxu0 %v31_v5  ;;  %158 = vmatpush.msrb.mxu3 %v32_v6  ;;  %v38_v15 = vld [vmem:[%s4586_s1 + $0xb0] sm:$0xff]  ;;  %v25_v16 = vld [vmem:[%s4586_s1 + $0x48] sm:$0xff]  ;;  %v36_v17 = vld [vmem:[%s4586_s1 + $0xa0] sm:$0xff] }
   0x7   :  { %218 = vmatpush.msra.mxu2 %v35_v9  ;;  %278 = vmatpush.msra.mxu1 %v38_v15  ;;  %v2095_v18 = vld [vmem:[%s4587_s2 + $0x70] sm:$0xf]  ;;  %v2884_v19 = vld [vmem:[%s4587_s2 + $0x74] sm:$0xf0]  ;;  %v37_v20 = vld [vmem:[%s4586_s1 + $0xa8] sm:$0xff] }
   0x8   :  { %139 = vmatpush.msrb.mxu0 %v18_v7  ;;  %159 = vmatpush.msrb.mxu3 %v19_v8  ;;  %v2159_v21 = vld [vmem:[%s4587_s2 + $0xf0] sm:$0xf]  ;;  %v2900_v22 = vld [vmem:[%s4587_s2 + $0xf4] sm:$0xf0]  ;;  %v24_v25 = vld [vmem:[%s4586_s1 + $0x40] sm:$0xff]  ;;  %v2096_v26 = vor.u32 %v2884_v19, %v2095_v18 }
   0x9   :  { %219 = vmatpush.msra.mxu2 %v22_v12  ;;  %v39_v23 = vld [vmem:[%s4586_s1 + $0xb8] sm:$0xff]  ;;  %279 = vmatpush.msra.mxu1 %v25_v16  ;;  %v26_v27 = vld [vmem:[%s4586_s1 + $0x50] sm:$0xff]  ;;  %v2160_v28 = vor.u32 %v2900_v22, %v2159_v21  ;;  %v2087_v29 = vld [vmem:[%s4587_s2 + $0x60] sm:$0xf] }
   0xa   :  { %198 = vmatpush.msra.mxu3 %v34_v10  ;;  %178 = vmatpush.msra.mxu0 %v33_v11  ;;  %v23_v24 = vld [vmem:[%s4586_s1 + $0x38] sm:$0xff]  ;;  %v2882_v30 = vld [vmem:[%s4587_s2 + $0x64] sm:$0xf0]  ;;  %v2151_v31 = vld [vmem:[%s4587_s2 + $0xe0] sm:$0xf] }
   0xb   :  { %2030 = vmatmul.msk.f32.vlgmr.msra.gmra.mxu2 %vm80_vm0, %v3146_v4  ;;  %2033 = vmatmul.msk.f32.vlgmr.msra.gmra.mxu1 %vm80_vm0, %v3146_v4  ;;  %v2898_v32 = vld [vmem:[%s4587_s2 + $0xe4] sm:$0xf0]  ;;  %v40_v33 = vld [vmem:[%s4586_s1 + $0xc0] sm:$0xff]  ;;  %v2088_v35 = vor.u32 %v2882_v30, %v2087_v29  ;;  %v2079_v36 = vld [vmem:[%s4587_s2 + $0x50] sm:$0xf] }
   0xc   :  { %199 = vmatpush.msra.mxu3 %v21_v13  ;;  %179 = vmatpush.msra.mxu0 %v20_v14  ;;  %v41_v34 = vld [vmem:[%s4586_s1 + $0xc8] sm:$0xff]  ;;  %v2152_v37 = vor.u32 %v2898_v32, %v2151_v31  ;;  %v2880_v38 = vld [vmem:[%s4587_s2 + $0x54] sm:$0xf0]  ;;  %v2143_v39 = vld [vmem:[%s4587_s2 + $0xd0] sm:$0xf] }
   0xd   :  { %2026 = vmatmul.msk.f32.vlgmr.msrb.gmra.mxu0 %vm80_vm0, %v3146_v4  ;;  %2027 = vmatmul.msk.f32.vlgmr.msrb.gmra.mxu3 %vm80_vm0, %v3146_v4  ;;  %v2896_v40 = vld [vmem:[%s4587_s2 + $0xd4] sm:$0xf0]  ;;  %v28_v42 = vld [vmem:[%s4586_s1 + $0x60] sm:$0xff]  ;;  %v2223_v43 = vld [vmem:[%s4587_s2 + $0x170] sm:$0xf]  ;;  %v2080_v45 = vor.u32 %v2880_v38, %v2079_v36 }
   0xe   :  { %238 = vmatpush.msrb.mxu3 %v36_v17  ;;  %258 = vmatpush.msrb.mxu0 %v37_v20  ;;  %v27_v41 = vld [vmem:[%s4586_s1 + $0x58] sm:$0xff]  ;;  %v2071_v46 = vld [vmem:[%s4587_s2 + $0x40] sm:$0xf]  ;;  %v2144_v47 = vor.u32 %v2896_v40, %v2143_v39  ;;  %v2287_v48 = vld [vmem:[%s4587_s2 + $0x1f0] sm:$0xf] }
   0xf   :  { %298 = vmatpush.msrb.mxu2 %v39_v23  ;;  %1623 = vmatpush.bf16.msrb.mxu1 %v2096_v26  ;;  %v2916_v44 = vld [vmem:[%s4587_s2 + $0x174] sm:$0xf0]  ;;  %v2878_v50 = vld [vmem:[%s4587_s2 + $0x44] sm:$0xf0]  ;;  %v2135_v51 = vld [vmem:[%s4587_s2 + $0xc0] sm:$0xf] }
  0x10   :  { %239 = vmatpush.msrb.mxu3 %v23_v24  ;;  %259 = vmatpush.msrb.mxu0 %v24_v25  ;;  %v2932_v49 = vld [vmem:[%s4587_s2 + $0x1f4] sm:$0xf0]  ;;  %v2894_v52 = vld [vmem:[%s4587_s2 + $0xc4] sm:$0xf0]  ;;  %v2224_v53 = vor.u32 %v2916_v44, %v2223_v43  ;;  %v2215_v54 = vld [vmem:[%s4587_s2 + $0x160] sm:$0xf]  ;;  %v2072_v57 = vor.u32 %v2878_v50, %v2071_v46 }
  0x11   :  { %299 = vmatpush.msrb.mxu2 %v26_v27  ;;  %v2914_v55 = vld [vmem:[%s4587_s2 + $0x164] sm:$0xf0]  ;;  %v2288_v56 = vor.u32 %v2932_v49, %v2287_v48  ;;  %v2063_v58 = vld [vmem:[%s4587_s2 + $0x30] sm:$0xf]  ;;  %v2136_v59 = vor.u32 %v2894_v52, %v2135_v51  ;;  %v2279_v60 = vld [vmem:[%s4587_s2 + $0x1e0] sm:$0xf] }
  0x12   :  { %v2930_v61 = vld [vmem:[%s4587_s2 + $0x1e4] sm:$0xf0]  ;;  %v2876_v62 = vld [vmem:[%s4587_s2 + $0x34] sm:$0xf0]  ;;  %v2127_v63 = vld [vmem:[%s4587_s2 + $0xb0] sm:$0xf]  ;;  %v2216_v1 = vor.u32 %v2914_v55, %v2215_v54 }
  0x13   :  { %1636 = vmatpush.bf16.msra.mxu2 %v2160_v28  ;;  %1624 = vmatpush.bf16.msrb.mxu1 %v2088_v35  ;;  %v2892_v0 = vld [vmem:[%s4587_s2 + $0xb4] sm:$0xf0]  ;;  %v2207_v2 = vld [vmem:[%s4587_s2 + $0x150] sm:$0xf]  ;;  %v2280_v5 = vor.u32 %v2930_v61, %v2279_v60  ;;  %v2064_v6 = vor.u32 %v2876_v62, %v2063_v58  ;;  %v2055_v7 = vld [vmem:[%s4587_s2 + $0x20] sm:$0xf] }
  0x14   :  { %2034 = vmatmul.msk.f32.vlgmr.msrb.gmra.mxu2 %vm80_vm0, %v3146_v4  ;;  %v2912_v3 = vld [vmem:[%s4587_s2 + $0x154] sm:$0xf0]  ;;  %v2128_v8 = vor.u32 %v2892_v0, %v2127_v63  ;;  %v2271_v9 = vld [vmem:[%s4587_s2 + $0x1d0] sm:$0xf]  ;;  %v2874_v11 = vld [vmem:[%s4587_s2 + $0x24] sm:$0xf0] }
  0x15   :  { %2029 = vmatmul.msk.f32.vlgmr.msra.gmra.mxu3 %vm80_vm0, %v3146_v4  ;;  %2028 = vmatmul.msk.f32.vlgmr.msra.gmra.mxu0 %vm80_vm0, %v3146_v4  ;;  %v2928_v10 = vld [vmem:[%s4587_s2 + $0x1d4] sm:$0xf0]  ;;  %v2119_v12 = vld [vmem:[%s4587_s2 + $0xa0] sm:$0xf]  ;;  %v2890_v13 = vld [vmem:[%s4587_s2 + $0xa4] sm:$0xf0]  ;;  %v2208_v14 = vor.u32 %v2912_v3, %v2207_v2  ;;  %v2056_v18 = vor.u32 %v2874_v11, %v2055_v7 }
  0x16   :  { %318 = vmatpush.msra.mxu3 %v40_v33  ;;  %338 = vmatpush.msra.mxu0 %v41_v34  ;;  %v2199_v15 = vld [vmem:[%s4587_s2 + $0x140] sm:$0xf]  ;;  %v2910_v16 = vld [vmem:[%s4587_s2 + $0x144] sm:$0xf0]  ;;  %v2272_v17 = vor.u32 %v2928_v10, %v2271_v9  ;;  %v2047_v19 = vld [vmem:[%s4587_s2 + $0x10] sm:$0xf]  ;;  %v2120_v20 = vor.u32 %v2890_v13, %v2119_v12 }
  0x17   :  { %1637 = vmatpush.bf16.msra.mxu2 %v2152_v37  ;;  %1625 = vmatpush.bf16.msrb.mxu1 %v2080_v45  ;;  %v2263_v21 = vld [vmem:[%s4587_s2 + $0x1c0] sm:$0xf]  ;;  %v2926_v22 = vld [vmem:[%s4587_s2 + $0x1c4] sm:$0xf0]  ;;  %v2872_v23 = vld [vmem:[%s4587_s2 + $0x14] sm:$0xf0]  ;;  %v2200_v26 = vor.u32 %v2910_v16, %v2199_v15 }
  0x18   :  { %319 = vmatpush.msra.mxu3 %v27_v41  ;;  %339 = vmatpush.msra.mxu0 %v28_v42  ;;  %v2111_v24 = vld [vmem:[%s4587_s2 + $0x90] sm:$0xf]  ;;  %v2888_v25 = vld [vmem:[%s4587_s2 + $0x94] sm:$0xf0]  ;;  %v2264_v29 = vor.u32 %v2926_v22, %v2263_v21  ;;  %v2039_v30 = vld [vmem:[%s4587_s2] sm:$0xf]  ;;  %v2048_v31 = vor.u32 %v2872_v23, %v2047_v19 }
  0x19   :  { %v2191_v27 = vld [vmem:[%s4587_s2 + $0x130] sm:$0xf]  ;;  %v2908_v28 = vld [vmem:[%s4587_s2 + $0x134] sm:$0xf0]  ;;  %v2112_v32 = vor.u32 %v2888_v25, %v2111_v24  ;;  %v2103_v36 = vld [vmem:[%s4587_s2 + $0x80] sm:$0xf] }
  0x1a   :  { %v2255_v33 = vld [vmem:[%s4587_s2 + $0x1b0] sm:$0xf]  ;;  %v2924_v34 = vld [vmem:[%s4587_s2 + $0x1b4] sm:$0xf0]  ;;  %v2886_v37 = vld [vmem:[%s4587_s2 + $0x84] sm:$0xf0]  ;;  %v2192_v41 = vor.u32 %v2908_v28, %v2191_v27 }
  0x1b   :  { %1638 = vmatpush.bf16.msra.mxu2 %v2144_v47  ;;  %1626 = vmatpush.bf16.msrb.mxu1 %v2072_v57  ;;  %v2351_v35 = vld [vmem:[%s4587_s2 + $0x270] sm:$0xf]  ;;  %v2948_v38 = vld [vmem:[%s4587_s2 + $0x274] sm:$0xf0]  ;;  %v2183_v42 = vld [vmem:[%s4587_s2 + $0x120] sm:$0xf]  ;;  %v2256_v44 = vor.u32 %v2924_v34, %v2255_v33  ;;  %v2104_v46 = vor.u32 %v2886_v37, %v2103_v36 }
  0x1c   :  { %v2415_v39 = vld [vmem:[%s4587_s2 + $0x2f0] sm:$0xf]  ;;  %v2964_v40 = vld [vmem:[%s4587_s2 + $0x2f4] sm:$0xf0]  ;;  %v2906_v43 = vld [vmem:[%s4587_s2 + $0x124] sm:$0xf0] }
  0x1d   :  { %2031 = vmatmul.msk.f32.vlgmr.msrb.gmra.mxu3 %vm80_vm0, %v3146_v4  ;;  %2032 = vmatmul.msk.f32.vlgmr.msrb.gmra.mxu0 %vm80_vm0, %v3146_v4  ;;  %v2247_v47 = vld [vmem:[%s4587_s2 + $0x1a0] sm:$0xf]  ;;  %v2922_v48 = vld [vmem:[%s4587_s2 + $0x1a4] sm:$0xf0] }
  0x1e   :  { %1649 = vmatpush.bf16.msrb.mxu3 %v2224_v53  ;;  %1662 = vmatpush.bf16.msrb.mxu0 %v2288_v56 }
  0x1f   :  { %1639 = vmatpush.bf16.msra.mxu2 %v2136_v59  ;;  %1627 = vmatpush.bf16.msrb.mxu1 %v2064_v6 }
  0x22   :  { %1650 = vmatpush.bf16.msrb.mxu3 %v2216_v1  ;;  %1663 = vmatpush.bf16.msrb.mxu0 %v2280_v5 }
  0x23   :  { %1640 = vmatpush.bf16.msra.mxu2 %v2128_v8  ;;  %1628 = vmatpush.bf16.msrb.mxu1 %v2056_v18 }
  0x25   :  { %2035 = vmatmul.msk.f32.vlgmr.msra.gmra.mxu3 %vm80_vm0, %v3146_v4  ;;  %2036 = vmatmul.msk.f32.vlgmr.msra.gmra.mxu0 %vm80_vm0, %v3146_v4  ;;  %v2870_v4 = vld [vmem:[%s4587_s2 + $0x4] sm:$0xf0] }
  0x26   :  { %1651 = vmatpush.bf16.msrb.mxu3 %v2208_v14  ;;  %1664 = vmatpush.bf16.msrb.mxu0 %v2272_v17  ;;  %v2040_v45 = vor.u32 %v2870_v4, %v2039_v30 }
  0x27   :  { %1641 = vmatpush.bf16.msra.mxu2 %v2120_v20  ;;  %1629 = vmatpush.bf16.msrb.mxu1 %v2048_v31 }
  0x2a   :  { %1652 = vmatpush.bf16.msrb.mxu3 %v2200_v26  ;;  %1665 = vmatpush.bf16.msrb.mxu0 %v2264_v29 }
  0x2b   :  { %1642 = vmatpush.bf16.msra.mxu2 %v2112_v32 }
  0x2c   :  { %8 = vsyncpa [#allocation3], 0  ;;  %v2352_v49 = vor.u32 %v2948_v38, %v2351_v35  ;;  %v2343_v50 = vld [vmem:[%s4587_s2 + $0x260] sm:$0xf]  ;;  %v2416_v51 = vor.u32 %v2964_v40, %v2415_v39  ;;  %v2946_v52 = vld [vmem:[%s4587_s2 + $0x264] sm:$0xf0]  ;;  %v2184_v55 = vor.u32 %v2906_v43, %v2183_v42  ;;  %v2248_v57 = vor.u32 %v2922_v48, %v2247_v47  ;;  %1630 = vmatpush.bf16.msrb.mxu1 %v2040_v45 }
  0x2d   :  { %v2407_v53 = vld [vmem:[%s4587_s2 + $0x2e0] sm:$0xf]  ;;  %v2962_v54 = vld [vmem:[%s4587_s2 + $0x2e4] sm:$0xf0]  ;;  %v2175_v56 = vld [vmem:[%s4587_s2 + $0x110] sm:$0xf]  ;;  %v2344_v61 = vor.u32 %v2946_v52, %v2343_v50 }
  0x2e   :  { %1653 = vmatpush.bf16.msrb.mxu3 %v2192_v41  ;;  %1666 = vmatpush.bf16.msrb.mxu0 %v2256_v44  ;;  %v2904_v58 = vld [vmem:[%s4587_s2 + $0x114] sm:$0xf0]  ;;  %v2239_v59 = vld [vmem:[%s4587_s2 + $0x190] sm:$0xf]  ;;  %v2408_v63 = vor.u32 %v2962_v54, %v2407_v53  ;;  %v2167_v5 = vld [vmem:[%s4587_s2 + $0x100] sm:$0xf] }
  0x2f   :  { %1643 = vmatpush.bf16.msra.mxu2 %v2104_v46  ;;  %v2920_v60 = vld [vmem:[%s4587_s2 + $0x194] sm:$0xf0]  ;;  %v2335_v62 = vld [vmem:[%s4587_s2 + $0x250] sm:$0xf]  ;;  %v2176_v3 = vor.u32 %v2904_v58, %v2175_v56  ;;  %v2902_v6 = vld [vmem:[%s4587_s2 + $0x104] sm:$0xf0] }
  0x30   :  { %1675 = vmatpush.bf16.msra.mxu1 %v2352_v49  ;;  %v2944_v0 = vld [vmem:[%s4587_s2 + $0x254] sm:$0xf0]  ;;  %v2399_v1 = vld [vmem:[%s4587_s2 + $0x2d0] sm:$0xf]  ;;  %v2240_v8 = vor.u32 %v2920_v60, %v2239_v59  ;;  %v2231_v10 = vld [vmem:[%s4587_s2 + $0x180] sm:$0xf]  ;;  %v2168_v20 = vor.u32 %v2902_v6, %v2167_v5 }
  0x31   :  { %v2960_v2 = vld [vmem:[%s4587_s2 + $0x2d4] sm:$0xf0]  ;;  %v2479_v7 = vld [vmem:[%s4587_s2 + $0x370] sm:$0xf]  ;;  %v2918_v11 = vld [vmem:[%s4587_s2 + $0x184] sm:$0xf0]  ;;  %v2336_v12 = vor.u32 %v2944_v0, %v2335_v62 }
  0x32   :  { %1654 = vmatpush.bf16.msrb.mxu3 %v2184_v55  ;;  %1667 = vmatpush.bf16.msrb.mxu0 %v2248_v57  ;;  %v2980_v9 = vld [vmem:[%s4587_s2 + $0x374] sm:$0xf0]  ;;  %v2327_v13 = vld [vmem:[%s4587_s2 + $0x240] sm:$0xf]  ;;  %v2400_v14 = vor.u32 %v2960_v2, %v2399_v1  ;;  %v2543_v15 = vld [vmem:[%s4587_s2 + $0x3f0] sm:$0xf]  ;;  %v2232_v21 = vor.u32 %v2918_v11, %v2231_v10 }
  0x33   :  { %1688 = vmatpush.bf16.msrb.mxu2 %v2416_v51  ;;  %v2996_v16 = vld [vmem:[%s4587_s2 + $0x3f4] sm:$0xf0]  ;;  %v2942_v17 = vld [vmem:[%s4587_s2 + $0x244] sm:$0xf0]  ;;  %v2391_v18 = vld [vmem:[%s4587_s2 + $0x2c0] sm:$0xf]  ;;  %v2480_v22 = vor.u32 %v2980_v9, %v2479_v7 }
  0x34   :  { %1676 = vmatpush.bf16.msra.mxu1 %v2344_v61  ;;  %v2958_v19 = vld [vmem:[%s4587_s2 + $0x2c4] sm:$0xf0]  ;;  %v2471_v23 = vld [vmem:[%s4587_s2 + $0x360] sm:$0xf]  ;;  %v2544_v24 = vor.u32 %v2996_v16, %v2543_v15  ;;  %v2328_v25 = vor.u32 %v2942_v17, %v2327_v13  ;;  %v2319_v30 = vld [vmem:[%s4587_s2 + $0x230] sm:$0xf] }
  0x35   :  { %v2978_v26 = vld [vmem:[%s4587_s2 + $0x364] sm:$0xf0]  ;;  %v2392_v27 = vor.u32 %v2958_v19, %v2391_v18  ;;  %v2535_v28 = vld [vmem:[%s4587_s2 + $0x3e0] sm:$0xf]  ;;  %v2940_v31 = vld [vmem:[%s4587_s2 + $0x234] sm:$0xf0] }
  0x36   :  { %1655 = vmatpush.bf16.msrb.mxu3 %v2176_v3  ;;  %1668 = vmatpush.bf16.msrb.mxu0 %v2240_v8  ;;  %v2994_v29 = vld [vmem:[%s4587_s2 + $0x3e4] sm:$0xf0]  ;;  %v2472_v4 = vor.u32 %v2978_v26, %v2471_v23  ;;  %v2320_v33 = vor.u32 %v2940_v31, %v2319_v30  ;;  %v2463_v34 = vld [vmem:[%s4587_s2 + $0x350] sm:$0xf]  ;;  %v2976_v35 = vld [vmem:[%s4587_s2 + $0x354] sm:$0xf0] }
  0x37   :  { %1689 = vmatpush.bf16.msrb.mxu2 %v2408_v63  ;;  %v2536_v32 = vor.u32 %v2994_v29, %v2535_v28  ;;  %v2311_v36 = vld [vmem:[%s4587_s2 + $0x220] sm:$0xf]  ;;  %v2938_v37 = vld [vmem:[%s4587_s2 + $0x224] sm:$0xf0]  ;;  %v2464_v38 = vor.u32 %v2976_v35, %v2463_v34  ;;  %v2383_v43 = vld [vmem:[%s4587_s2 + $0x2b0] sm:$0xf] }
  0x38   :  { %1677 = vmatpush.bf16.msra.mxu1 %v2336_v12  ;;  %v2312_v39 = vor.u32 %v2938_v37, %v2311_v36  ;;  %v2455_v40 = vld [vmem:[%s4587_s2 + $0x340] sm:$0xf]  ;;  %v2974_v41 = vld [vmem:[%s4587_s2 + $0x344] sm:$0xf0]  ;;  %v2956_v44 = vld [vmem:[%s4587_s2 + $0x2b4] sm:$0xf0] }
  0x39   :  { %v2456_v42 = vor.u32 %v2974_v41, %v2455_v40  ;;  %v2527_v45 = vld [vmem:[%s4587_s2 + $0x3d0] sm:$0xf]  ;;  %v2384_v46 = vor.u32 %v2956_v44, %v2383_v43  ;;  %v2992_v47 = vld [vmem:[%s4587_s2 + $0x3d4] sm:$0xf0]  ;;  %v2375_v55 = vld [vmem:[%s4587_s2 + $0x2a0] sm:$0xf] }
  0x3a   :  { %1656 = vmatpush.bf16.msrb.mxu3 %v2168_v20  ;;  %1669 = vmatpush.bf16.msrb.mxu0 %v2232_v21  ;;  %v2528_v48 = vor.u32 %v2992_v47, %v2527_v45  ;;  %v2303_v49 = vld [vmem:[%s4587_s2 + $0x210] sm:$0xf]  ;;  %v2936_v50 = vld [vmem:[%s4587_s2 + $0x214] sm:$0xf0]  ;;  %v2954_v56 = vld [vmem:[%s4587_s2 + $0x2a4] sm:$0xf0] }
  0x3b   :  { %1690 = vmatpush.bf16.msrb.mxu2 %v2400_v14  ;;  %v2447_v51 = vld [vmem:[%s4587_s2 + $0x330] sm:$0xf]  ;;  %v2304_v52 = vor.u32 %v2936_v50, %v2303_v49  ;;  %v2972_v53 = vld [vmem:[%s4587_s2 + $0x334] sm:$0xf0]  ;;  %v2519_v57 = vld [vmem:[%s4587_s2 + $0x3c0] sm:$0xf]  ;;  %v2376_v58 = vor.u32 %v2954_v56, %v2375_v55 }
  0x3c   :  { %1678 = vmatpush.bf16.msra.mxu1 %v2328_v25  ;;  %v2448_v54 = vor.u32 %v2972_v53, %v2447_v51  ;;  %v2990_v59 = vld [vmem:[%s4587_s2 + $0x3c4] sm:$0xf0]  ;;  %v2295_v61 = vld [vmem:[%s4587_s2 + $0x200] sm:$0xf]  ;;  %v2367_v3 = vld [vmem:[%s4587_s2 + $0x290] sm:$0xf] }
  0x3d   :  { %v2520_v60 = vor.u32 %v2990_v59, %v2519_v57  ;;  %v2934_v62 = vld [vmem:[%s4587_s2 + $0x204] sm:$0xf0]  ;;  %v2439_v63 = vld [vmem:[%s4587_s2 + $0x320] sm:$0xf]  ;;  %v2952_v5 = vld [vmem:[%s4587_s2 + $0x294] sm:$0xf0] }
  0x3e   :  { %1701 = vmatpush.bf16.msra.mxu3 %v2480_v22  ;;  %1714 = vmatpush.bf16.msra.mxu0 %v2544_v24  ;;  %v2296_v0 = vor.u32 %v2934_v62, %v2295_v61  ;;  %v2970_v1 = vld [vmem:[%s4587_s2 + $0x324] sm:$0xf0]  ;;  %v2511_v6 = vld [vmem:[%s4587_s2 + $0x3b0] sm:$0xf]  ;;  %v2368_v7 = vor.u32 %v2952_v5, %v2367_v3  ;;  %v2988_v8 = vld [vmem:[%s4587_s2 + $0x3b4] sm:$0xf0] }
  0x3f   :  { %1691 = vmatpush.bf16.msrb.mxu2 %v2392_v27  ;;  %v2440_v2 = vor.u32 %v2970_v1, %v2439_v63  ;;  %v2512_v9 = vor.u32 %v2988_v8, %v2511_v6  ;;  %v2431_v10 = vld [vmem:[%s4587_s2 + $0x310] sm:$0xf]  ;;  %v2968_v11 = vld [vmem:[%s4587_s2 + $0x314] sm:$0xf0]  ;;  %v2359_v13 = vld [vmem:[%s4587_s2 + $0x280] sm:$0xf] }
  0x40   :  { %1679 = vmatpush.bf16.msra.mxu1 %v2320_v33  ;;  %v2432_v12 = vor.u32 %v2968_v11, %v2431_v10  ;;  %v2950_v14 = vld [vmem:[%s4587_s2 + $0x284] sm:$0xf0]  ;;  %v2503_v15 = vld [vmem:[%s4587_s2 + $0x3a0] sm:$0xf]  ;;  %v2495_v22 = vld [vmem:[%s4587_s2 + $0x390] sm:$0xf] }
  0x41   :  { %v2360_v16 = vor.u32 %v2950_v14, %v2359_v13  ;;  %v2986_v17 = vld [vmem:[%s4587_s2 + $0x3a4] sm:$0xf0]  ;;  %v2423_v19 = vld [vmem:[%s4587_s2 + $0x300] sm:$0xf]  ;;  %v2984_v23 = vld [vmem:[%s4587_s2 + $0x394] sm:$0xf0] }
  0x42   :  { %1702 = vmatpush.bf16.msra.mxu3 %v2472_v4  ;;  %1715 = vmatpush.bf16.msra.mxu0 %v2536_v32  ;;  %v2504_v18 = vor.u32 %v2986_v17, %v2503_v15  ;;  %v2966_v20 = vld [vmem:[%s4587_s2 + $0x304] sm:$0xf0]  ;;  %v2496_v24 = vor.u32 %v2984_v23, %v2495_v22  ;;  %v2487_v25 = vld [vmem:[%s4587_s2 + $0x380] sm:$0xf]  ;;  %v2607_v33 = vld [vmem:[%s4587_s2 + $0x470] sm:$0xf] }
  0x43   :  { %1692 = vmatpush.bf16.msrb.mxu2 %v2384_v46  ;;  %v2424_v21 = vor.u32 %v2966_v20, %v2423_v19  ;;  %v2982_v26 = vld [vmem:[%s4587_s2 + $0x384] sm:$0xf0]  ;;  %v3012_v34 = vld [vmem:[%s4587_s2 + $0x474] sm:$0xf0]  ;;  %v2599_v40 = vld [vmem:[%s4587_s2 + $0x460] sm:$0xf] }
  0x44   :  { %1680 = vmatpush.bf16.msra.mxu1 %v2312_v39  ;;  %v2488_v27 = vor.u32 %v2982_v26, %v2487_v25  ;;  %v2019_v28 = vld [vmem:[%s4586_s1 + $0xd0] ss:$8 sm:$0xf]  ;;  %v2608_v37 = vor.u32 %v3012_v34, %v2607_v33  ;;  %vm1961_vm1 = vcmask 1041408   ;;  %vm1963_vm2 = vcmask 328704   ;;  %s2010_s13 = sshll.u32 %s4588_s3, 4  ;;  %s2011_s13 = int_to_ptr.hbm [resolvable:$true] %s2010_s13 }
  0x45   :  { %v2020_v29 = vld [vmem:[%s4586_s1 + $0xd0] ss:$8 sm:$0xf0]  ;;  %vm2000_vm7 = vcmask 330754  }
  0x46   :  { %1703 = vmatpush.bf16.msra.mxu3 %v2464_v38  ;;  %1716 = vmatpush.bf16.msra.mxu0 %v2528_v48  ;;  %v3630_v30 = vor.u32 %v2020_v29, %v2019_v28  ;;  %v3010_v41 = vld [vmem:[%s4587_s2 + $0x464] sm:$0xf0]  ;;  %v2671_v44 = vld [vmem:[%s4587_s2 + $0x4f0] sm:$0xf]  ;;  %v3028_v45 = vld [vmem:[%s4587_s2 + $0x4f4] sm:$0xf0] }
  0x47   :  { %1693 = vmatpush.bf16.msrb.mxu2 %v2376_v58  ;;  %v2600_v47 = vor.u32 %v3010_v41, %v2599_v40  ;;  %v2591_v48 = vld [vmem:[%s4587_s2 + $0x450] sm:$0xf]  ;;  %v3008_v49 = vld [vmem:[%s4587_s2 + $0x454] sm:$0xf0]  ;;  %v2663_v58 = vld [vmem:[%s4587_s2 + $0x4e0] sm:$0xf] }
  0x48   :  { %1681 = vmatpush.bf16.msra.mxu1 %v2304_v52  ;;  %v54_v31 = vperm.slane %v3630_v30, 0  ;;  %v55_v36 = vperm.slane %v3630_v30, 1  ;;  %v56_v39 = vperm.slane %v3630_v30, 2  ;;  %v2735_v52 = vld [vmem:[%s4587_s2 + $0x570] sm:$0xf]  ;;  %v57_v57 = vperm.slane %v3630_v30, 3  ;;  %vm2001_vm8 = vmor %vm2000_vm7, %vm1961_vm1 }
  0x49   :  { %v3044_v53 = vld [vmem:[%s4587_s2 + $0x574] sm:$0xf0]  ;;  %v3026_v59 = vld [vmem:[%s4587_s2 + $0x4e4] sm:$0xf0]  ;;  %v2583_v62 = vld [vmem:[%s4587_s2 + $0x440] sm:$0xf] }
  0x4a   :  { %1704 = vmatpush.bf16.msra.mxu3 %v2456_v42  ;;  %1717 = vmatpush.bf16.msra.mxu0 %v2520_v60  ;;  %v2592_v60 = vor.u32 %v3008_v49, %v2591_v48  ;;  %v2736_v61 = vor.u32 %v3044_v53, %v2735_v52  ;;  %v3006_v63 = vld [vmem:[%s4587_s2 + $0x444] sm:$0xf0]  ;;  %v2655_v5 = vld [vmem:[%s4587_s2 + $0x4d0] sm:$0xf]  ;;  %v3024_v8 = vld [vmem:[%s4587_s2 + $0x4d4] sm:$0xf0] }
  0x4b   :  { %1694 = vmatpush.bf16.msrb.mxu2 %v2368_v7  ;;  %v3042_v3 = vld [vmem:[%s4587_s2 + $0x564] sm:$0xf0]  ;;  %v2664_v7 = vor.u32 %v3026_v59, %v2663_v58  ;;  %v3060_v10 = vld [vmem:[%s4587_s2 + $0x5f4] sm:$0xf0]  ;;  %v60_v14 = vperm.slane %v3630_v30, 6  ;;  %v2656_v25 = vor.u32 %v3024_v8, %v2655_v5 }
  0x4c   :  { %1682 = vmatpush.bf16.msra.mxu1 %v2296_v0  ;;  %v2727_v0 = vld [vmem:[%s4587_s2 + $0x560] sm:$0xf]  ;;  %v3004_v13 = vld [vmem:[%s4587_s2 + $0x434] sm:$0xf0]  ;;  %v2719_v23 = vld [vmem:[%s4587_s2 + $0x550] sm:$0xf] }
  0x4d   :  { %v2728_v17 = vor.u32 %v3042_v3, %v2727_v0  ;;  %v2021_v19 = vld [vmem:[%s4586_s1 + $0x110] ss:$8 sm:$0xf] }
  0x4e   :  { %1705 = vmatpush.bf16.msra.mxu3 %v2448_v54  ;;  %1718 = vmatpush.bf16.msra.mxu0 %v2512_v9  ;;  %v2672_v54 = vor.u32 %v3028_v45, %v2671_v44  ;;  %v2799_v9 = vld [vmem:[%s4587_s2 + $0x5f0] sm:$0xf]  ;;  %v2647_v28 = vld [vmem:[%s4587_s2 + $0x4c0] sm:$0xf]  ;;  %v3022_v29 = vld [vmem:[%s4587_s2 + $0x4c4] sm:$0xf0] }
  0x4f   :  { %1695 = vmatpush.bf16.msrb.mxu2 %v2360_v16  ;;  %v2584_v16 = vor.u32 %v3006_v63, %v2583_v62  ;;  %v2022_v20 = vld [vmem:[%s4586_s1 + $0x110] ss:$8 sm:$0x10]  ;;  %v2800_v26 = vor.u32 %v3060_v10, %v2799_v9  ;;  %v2791_v33 = vld [vmem:[%s4587_s2 + $0x5e0] sm:$0xf]  ;;  %v2648_v45 = vor.u32 %v3022_v29, %v2647_v28 }
  0x50   :  { %v3058_v34 = vld [vmem:[%s4587_s2 + $0x5e4] sm:$0xf0]  ;;  %v3020_v48 = vld [vmem:[%s4587_s2 + $0x4b4] sm:$0xf0]  ;;  %v2775_v8 = vld [vmem:[%s4587_s2 + $0x5c0] sm:$0xf] }
  0x51   :  { %v3002_v41 = vld [vmem:[%s4587_s2 + $0x424] sm:$0xf0]  ;;  %v3056_v52 = vld [vmem:[%s4587_s2 + $0x5d4] sm:$0xf0] }
  0x52   :  { %1706 = vmatpush.bf16.msra.mxu3 %v2440_v2  ;;  %1719 = vmatpush.bf16.msra.mxu0 %v2504_v18  ;;  %v58_v2 = vperm.slane %v3630_v30, 4  ;;  %v3000_v58 = vld [vmem:[%s4587_s2 + $0x414] sm:$0xf0]  ;;  %v3018_v3 = vld [vmem:[%s4587_s2 + $0x4a4] sm:$0xf0] }
  0x53   :  { %v3036_v62 = vld [vmem:[%s4587_s2 + $0x534] sm:$0xf0]  ;;  %v3054_v9 = vld [vmem:[%s4587_s2 + $0x5c4] sm:$0xf0] }
  0x56   :  { %1707 = vmatpush.bf16.msra.mxu3 %v2432_v12  ;;  %1720 = vmatpush.bf16.msra.mxu0 %v2496_v24  ;;  %v2575_v12 = vld [vmem:[%s4587_s2 + $0x430] sm:$0xf]  ;;  %v3040_v24 = vld [vmem:[%s4587_s2 + $0x554] sm:$0xf0] }
  0x5a   :  { %1708 = vmatpush.bf16.msra.mxu3 %v2424_v21  ;;  %1721 = vmatpush.bf16.msra.mxu0 %v2488_v27  ;;  %v59_v27 = vperm.slane %v3630_v30, 5 }
  0x82   :  { %v101_v4 = vpop.f32.mrf.mxu0 }
  0x83   :  { %v102_v32 = vadd.f32 %v101_v4, %v54_v31 }
  0x85   :  { %v344_v35 = vmax.f32 %v102_v32, 0.0 }
  0x87   :  { %v3640_v38 = vpack.c.bf16 %v344_v35, %v344_v35  ;;  %v3740_v35 = vor.u32 %v2022_v20, %v2021_v19  ;;  %v2776_v20 = vor.u32 %v3054_v9, %v2775_v8 }
  0x88   :  { %v121_v42 = vpop.f32.mrf.mxu3  ;;  %v281_v28 = vpop.f32.mrf.mxu1 }
  0x89   :  { %v122_v43 = vadd.f32 %v121_v42, %v55_v36  ;;  %1631 = vmatmul.bf16.vlgmr.msrb.gmra.mxu1 %v3640_v38  ;;  %v2576_v36 = vor.u32 %v3004_v13, %v2575_v12  ;;  %v2711_v42 = vld [vmem:[%s4587_s2 + $0x540] sm:$0xf]  ;;  %v62_v53 = vperm.slane %v3740_v35, 0  ;;  %v64_v29 = vperm.slane %v3740_v35, 2 }
  0x8a   :  { %1727 = vmatpush.bf16.msrb.mxu1 %v2608_v37  ;;  %v141_v46 = vpop.f32.mrf.mxu0  ;;  %v2720_v37 = vor.u32 %v3040_v24, %v2719_v23  ;;  %v2551_v13 = vld [vmem:[%s4587_s2 + $0x400] sm:$0xf]  ;;  %v63_v23 = vperm.slane %v3740_v35, 1 }
  0x8b   :  { %v345_v50 = vmax.f32 %v122_v43, 0.0  ;;  %v142_v51 = vadd.f32 %v141_v46, %v56_v39  ;;  %v2567_v39 = vld [vmem:[%s4587_s2 + $0x420] sm:$0xf]  ;;  %v3038_v43 = vld [vmem:[%s4587_s2 + $0x544] sm:$0xf0]  ;;  %v2792_v46 = vor.u32 %v3058_v34, %v2791_v33 }
  0x8d   :  { %v3668_v55 = vpack.c.bf16 %v345_v50, %v345_v50  ;;  %v346_v56 = vmax.f32 %v142_v51, 0.0  ;;  %v2783_v51 = vld [vmem:[%s4587_s2 + $0x5d0] sm:$0xf] }
  0x8e   :  { %1728 = vmatpush.bf16.msrb.mxu1 %v2600_v47  ;;  %v221_v18 = vpop.f32.mrf.mxu2  ;;  %v2639_v47 = vld [vmem:[%s4587_s2 + $0x4b0] sm:$0xf]  ;;  %v2784_v0 = vor.u32 %v3056_v52, %v2783_v51  ;;  %v2759_v51 = vld [vmem:[%s4587_s2 + $0x5a0] sm:$0xf]  ;;  %v3050_v52 = vld [vmem:[%s4587_s2 + $0x5a4] sm:$0xf0] }
  0x8f   :  { %v3686_v1 = vpack.c.bf16 %v346_v56, %v346_v56  ;;  %1644 = vmatmul.bf16.vlgmr.msra.gmra.mxu2 %v3668_v55  ;;  %v222_v32 = vadd.f32 %v221_v18, %v60_v14  ;;  %v2712_v56 = vor.u32 %v3038_v43, %v2711_v42  ;;  %v2640_v63 = vor.u32 %v3020_v48, %v2639_v47  ;;  %v2695_v14 = vld [vmem:[%s4587_s2 + $0x520] sm:$0xf] }
  0x90   :  { %1740 = vmatpush.bf16.msra.mxu2 %v2672_v54  ;;  %v161_v6 = vpop.f32.mrf.mxu3  ;;  %v2568_v54 = vor.u32 %v3002_v41, %v2567_v39  ;;  %v3032_v39 = vld [vmem:[%s4587_s2 + $0x514] sm:$0xf0]  ;;  %v282_v43 = vadd.f32 %v281_v28, %v63_v23  ;;  %v2153_v23 = vld [vmem:[%s4587_s2 + $0xe8] sm:$0xf0]  ;;  %v2879_v28 = vld [vmem:[%s4587_s2 + $0x54] sm:$0xf] }
  0x91   :  { %v162_v11 = vadd.f32 %v161_v6, %v57_v57  ;;  %1657 = vmatmul.bf16.vlgmr.msrb.gmra.mxu3 %v3686_v1  ;;  %v350_v50 = vmax.f32 %v222_v32, 0.0  ;;  %v2559_v57 = vld [vmem:[%s4587_s2 + $0x410] sm:$0xf] }
  0x92   :  { %1729 = vmatpush.bf16.msrb.mxu1 %v2592_v60  ;;  %1753 = vmatpush.bf16.msrb.mxu3 %v2736_v61  ;;  %v181_v15 = vpop.f32.mrf.mxu0  ;;  %v2703_v61 = vld [vmem:[%s4587_s2 + $0x530] sm:$0xf] }
  0x93   :  { %v347_v21 = vmax.f32 %v162_v11, 0.0  ;;  %v182_v22 = vadd.f32 %v181_v15, %v58_v2  ;;  %v2631_v2 = vld [vmem:[%s4587_s2 + $0x4a0] sm:$0xf]  ;;  %v3791_v6 = vpack.c.bf16 %v350_v50, %v350_v50  ;;  %v2560_v11 = vor.u32 %v3000_v58, %v2559_v57  ;;  %v3034_v15 = vld [vmem:[%s4587_s2 + $0x524] sm:$0xf0] }
  0x94   :  { %1741 = vmatpush.bf16.msra.mxu2 %v2664_v7  ;;  %v61_v7 = vperm.slane %v3630_v30, 7  ;;  %v2704_v12 = vor.u32 %v3036_v62, %v2703_v61  ;;  %v2998_v30 = vld [vmem:[%s4587_s2 + $0x404] sm:$0xf0]  ;;  %v2632_v19 = vor.u32 %v3018_v3, %v2631_v2  ;;  %v2696_v32 = vor.u32 %v3034_v15, %v2695_v14  ;;  %v2679_v57 = vld [vmem:[%s4587_s2 + $0x500] sm:$0xf] }
  0x95   :  { %v3732_v31 = vpack.c.bf16 %v347_v21, %v347_v21  ;;  %v348_v4 = vmax.f32 %v182_v22, 0.0  ;;  %v2623_v21 = vld [vmem:[%s4587_s2 + $0x490] sm:$0xf]  ;;  %v3016_v22 = vld [vmem:[%s4587_s2 + $0x494] sm:$0xf0]  ;;  %v353_v62 = vmax.f32 %v282_v43, 0.0 }
  0x96   :  { %1730 = vmatpush.bf16.msrb.mxu1 %v2584_v16  ;;  %1754 = vmatpush.bf16.msrb.mxu3 %v2728_v17  ;;  %v2863_v16 = vld [vmem:[%s4587_s2 + $0x670] sm:$0xf]  ;;  %v3076_v17 = vld [vmem:[%s4587_s2 + $0x674] sm:$0xf0]  ;;  %v2624_v41 = vor.u32 %v3016_v22, %v2623_v21  ;;  %v3014_v50 = vld [vmem:[%s4587_s2 + $0x484] sm:$0xf0] }
  0x97   :  { %v3745_v40 = vpack.c.bf16 %v348_v4, %v348_v4  ;;  %1670 = vmatmul.bf16.vlgmr.msrb.gmra.mxu0 %v3732_v31  ;;  %v2552_v4 = vor.u32 %v2998_v30, %v2551_v13  ;;  %v301_v33 = vpop.f32.mrf.mxu2  ;;  %v3072_v61 = vld [vmem:[%s4587_s2 + $0x654] sm:$0xf0]  ;;  %v2899_v2 = vld [vmem:[%s4587_s2 + $0xf4] sm:$0xf]  ;;  %v2161_v3 = vld [vmem:[%s4587_s2 + $0xf8] sm:$0xf0] }
  0x98   :  { %1742 = vmatpush.bf16.msra.mxu2 %v2656_v25  ;;  %1766 = vmatpush.bf16.msrb.mxu0 %v2800_v26  ;;  %v201_v44 = vpop.f32.mrf.mxu3  ;;  %v2767_v26 = vld [vmem:[%s4587_s2 + $0x5b0] sm:$0xf]  ;;  %v2881_v30 = vld [vmem:[%s4587_s2 + $0x64] sm:$0xf]  ;;  %v2089_v14 = vld [vmem:[%s4587_s2 + $0x68] sm:$0xf0] }
  0x99   :  { %v202_v49 = vadd.f32 %v201_v44, %v59_v27  ;;  %1683 = vmatmul.bf16.vlgmr.msra.gmra.mxu1 %v3745_v40  ;;  %v3052_v27 = vld [vmem:[%s4587_s2 + $0x5b4] sm:$0xf0]  ;;  %v2855_v44 = vld [vmem:[%s4587_s2 + $0x660] sm:$0xf]  ;;  %v3070_v21 = vld [vmem:[%s4587_s2 + $0x644] sm:$0xf0] }
  0x9a   :  { %1731 = vmatpush.bf16.msrb.mxu1 %v2576_v36  ;;  %1755 = vmatpush.bf16.msrb.mxu3 %v2720_v37  ;;  %v261_v59 = vpop.f32.mrf.mxu0  ;;  %v2864_v36 = vor.u32 %v3076_v17, %v2863_v16  ;;  %v2687_v37 = vld [vmem:[%s4587_s2 + $0x510] sm:$0xf]  ;;  %v2768_v42 = vor.u32 %v3052_v27, %v2767_v26  ;;  %v2164_v16 = vor.u32 %v2899_v2, %v2161_v3  ;;  %v2839_v17 = vld [vmem:[%s4587_s2 + $0x640] sm:$0xf]  ;;  %v2897_v22 = vld [vmem:[%s4587_s2 + $0xe4] sm:$0xf] }
  0x9b   :  { %v349_v60 = vmax.f32 %v202_v49, 0.0  ;;  %v262_v10 = vadd.f32 %v261_v59, %v62_v53  ;;  %v302_v49 = vadd.f32 %v301_v33, %v64_v29  ;;  %v2688_v53 = vor.u32 %v3032_v39, %v2687_v37  ;;  %v3030_v59 = vld [vmem:[%s4587_s2 + $0x504] sm:$0xf0]  ;;  %v2743_v26 = vld [vmem:[%s4587_s2 + $0x580] sm:$0xf] }
  0x9c   :  { %1743 = vmatpush.bf16.msra.mxu2 %v2648_v45  ;;  %1767 = vmatpush.bf16.msrb.mxu0 %v2792_v46  ;;  %v3074_v45 = vld [vmem:[%s4587_s2 + $0x664] sm:$0xf0]  ;;  %v2615_v46 = vld [vmem:[%s4587_s2 + $0x480] sm:$0xf]  ;;  %v2680_v13 = vor.u32 %v3030_v59, %v2679_v57  ;;  %v2081_v29 = vld [vmem:[%s4587_s2 + $0x58] sm:$0xf0]  ;;  %v2840_v33 = vor.u32 %v3070_v21, %v2839_v17 }
  0x9d   :  { %v3789_v5 = vpack.c.bf16 %v349_v60, %v349_v60  ;;  %v352_v25 = vmax.f32 %v262_v10, 0.0  ;;  %v2856_v58 = vor.u32 %v3074_v45, %v2855_v44  ;;  %v2847_v60 = vld [vmem:[%s4587_s2 + $0x650] sm:$0xf]  ;;  %v354_v8 = vmax.f32 %v302_v49, 0.0  ;;  %v3046_v27 = vld [vmem:[%s4587_s2 + $0x584] sm:$0xf0] }
  0x9e   :  { %1732 = vmatpush.bf16.msrb.mxu1 %v2568_v54  ;;  %1756 = vmatpush.bf16.msrb.mxu3 %v2712_v56  ;;  %v2883_v54 = vld [vmem:[%s4587_s2 + $0x74] sm:$0xf]  ;;  %v2097_v56 = vld [vmem:[%s4587_s2 + $0x78] sm:$0xf0]  ;;  %v2751_v10 = vld [vmem:[%s4587_s2 + $0x590] sm:$0xf]  ;;  %v2848_v15 = vor.u32 %v3072_v61, %v2847_v60  ;;  %v2084_v44 = vor.u32 %v2879_v28, %v2081_v29 }
  0x9f   :  { %1696 = vmatmul.bf16.vlgmr.msrb.gmra.mxu2 %v3789_v5  ;;  %v3851_v48 = vpack.c.bf16 %v352_v25, %v352_v25  ;;  %v2100_v9 = vor.u32 %v2883_v54, %v2097_v56  ;;  %v2092_v25 = vor.u32 %v2881_v30, %v2089_v14  ;;  %v3068_v37 = vld [vmem:[%s4587_s2 + $0x634] sm:$0xf0]  ;;  %v2145_v43 = vld [vmem:[%s4587_s2 + $0xd8] sm:$0xf0]  ;;  %v2073_v49 = vld [vmem:[%s4587_s2 + $0x48] sm:$0xf0] }
  0xa0   :  { %1744 = vmatpush.bf16.msra.mxu2 %v2640_v63  ;;  %1768 = vmatpush.bf16.msrb.mxu0 %v2784_v0  ;;  %v241_v18 = vpop.f32.mrf.mxu3  ;;  %v2616_v63 = vor.u32 %v3014_v50, %v2615_v46  ;;  %v2760_v0 = vor.u32 %v3050_v52, %v2759_v51  ;;  %v2877_v46 = vld [vmem:[%s4587_s2 + $0x44] sm:$0xf]  ;;  %v2217_v51 = vld [vmem:[%s4587_s2 + $0x168] sm:$0xf0]  ;;  %v2823_v54 = vld [vmem:[%s4587_s2 + $0x620] sm:$0xf] }
  0xa1   :  { %1709 = vmatmul.bf16.vlgmr.msra.gmra.mxu3 %v3791_v6  ;;  %v242_v24 = vadd.f32 %v241_v18, %v61_v7  ;;  %v65_v7 = vperm.slane %v3740_v35, 3  ;;  %v3904_v18 = vpack.c.bf16 %v353_v62, %v353_v62  ;;  %v2913_v50 = vld [vmem:[%s4587_s2 + $0x164] sm:$0xf]  ;;  %v3066_v57 = vld [vmem:[%s4587_s2 + $0x624] sm:$0xf0]  ;;  %v2076_v60 = vor.u32 %v2877_v46, %v2073_v49 }
  0xa2   :  { %1733 = vmatpush.bf16.msrb.mxu1 %v2560_v11  ;;  %1757 = vmatpush.bf16.msrb.mxu3 %v2704_v12  ;;  %v3048_v11 = vld [vmem:[%s4587_s2 + $0x594] sm:$0xf0]  ;;  %v2137_v59 = vld [vmem:[%s4587_s2 + $0xc8] sm:$0xf0]  ;;  %v2220_v61 = vor.u32 %v2913_v50, %v2217_v51  ;;  %v2875_v62 = vld [vmem:[%s4587_s2 + $0x34] sm:$0xf] }
  0xa3   :  { %v351_v34 = vmax.f32 %v242_v24, 0.0  ;;  %v3915_v24 = vpack.c.bf16 %v354_v8, %v354_v8  ;;  %v2209_v2 = vld [vmem:[%s4587_s2 + $0x158] sm:$0xf0]  ;;  %v66_v3 = vperm.slane %v3740_v35, 4  ;;  %v2873_v14 = vld [vmem:[%s4587_s2 + $0x24] sm:$0xf] }
  0xa4   :  { %1745 = vmatpush.bf16.msra.mxu2 %v2632_v19  ;;  %1769 = vmatpush.bf16.msrb.mxu0 %v2776_v20  ;;  %v2752_v19 = vor.u32 %v3048_v11, %v2751_v10  ;;  %v2815_v10 = vld [vmem:[%s4587_s2 + $0x610] sm:$0xf]  ;;  %v3064_v11 = vld [vmem:[%s4587_s2 + $0x614] sm:$0xf0]  ;;  %v2129_v35 = vld [vmem:[%s4587_s2 + $0xb8] sm:$0xf0] }
  0xa5   :  { %v3849_v47 = vpack.c.bf16 %v351_v34, %v351_v34  ;;  %v2156_v34 = vor.u32 %v2897_v22, %v2153_v23  ;;  %v2909_v17 = vld [vmem:[%s4587_s2 + $0x144] sm:$0xf]  ;;  %v2807_v22 = vld [vmem:[%s4587_s2 + $0x600] sm:$0xf]  ;;  %v3062_v23 = vld [vmem:[%s4587_s2 + $0x604] sm:$0xf0] }
  0xa6   :  { %1734 = vmatpush.bf16.msrb.mxu1 %v2552_v4  ;;  %1758 = vmatpush.bf16.msrb.mxu3 %v2696_v32  ;;  %v2915_v4 = vld [vmem:[%s4587_s2 + $0x174] sm:$0xf]  ;;  %v2225_v32 = vld [vmem:[%s4587_s2 + $0x178] sm:$0xf0]  ;;  %v2929_v49 = vld [vmem:[%s4587_s2 + $0x1e4] sm:$0xf] }
  0xa7   :  { %1722 = vmatmul.bf16.vlgmr.msra.gmra.mxu0 %v3849_v47  ;;  %v2228_v45 = vor.u32 %v2915_v4, %v2225_v32  ;;  %v2289_v4 = vld [vmem:[%s4587_s2 + $0x1f8] sm:$0xf0]  ;;  %v2871_v32 = vld [vmem:[%s4587_s2 + $0x14] sm:$0xf]  ;;  %v2281_v50 = vld [vmem:[%s4587_s2 + $0x1e8] sm:$0xf0] }
  0xa8   :  { %1746 = vmatpush.bf16.msra.mxu2 %v2624_v41  ;;  %1770 = vmatpush.bf16.msrb.mxu0 %v2768_v42  ;;  %v321_v12 = vpop.f32.mrf.mxu3  ;;  %v2744_v41 = vor.u32 %v3046_v27, %v2743_v26  ;;  %v2895_v42 = vld [vmem:[%s4587_s2 + $0xd4] sm:$0xf]  ;;  %v2121_v26 = vld [vmem:[%s4587_s2 + $0xa8] sm:$0xf0]  ;;  %v2869_v51 = vld [vmem:[%s4587_s2 + $0x4] sm:$0xf] }
  0xa9   :  { %1735 = vmatmul.bf16.vlgmr.msrb.gmra.mxu1 %v3851_v48  ;;  %v322_v20 = vadd.f32 %v321_v12, %v65_v7  ;;  %v2824_v7 = vor.u32 %v3066_v57, %v2823_v54  ;;  %v2891_v12 = vld [vmem:[%s4587_s2 + $0xb4] sm:$0xf]  ;;  %v2905_v54 = vld [vmem:[%s4587_s2 + $0x124] sm:$0xf]  ;;  %v2185_v57 = vld [vmem:[%s4587_s2 + $0x128] sm:$0xf0] }
  0xaa   :  { %1779 = vmatpush.bf16.msra.mxu1 %v2864_v36  ;;  %1759 = vmatpush.bf16.msrb.mxu3 %v2688_v53  ;;  %v2831_v36 = vld [vmem:[%s4587_s2 + $0x630] sm:$0xf]  ;;  %v2148_v53 = vor.u32 %v2895_v42, %v2145_v43  ;;  %v2132_v21 = vor.u32 %v2891_v12, %v2129_v35  ;;  %v2931_v27 = vld [vmem:[%s4587_s2 + $0x1f4] sm:$0xf]  ;;  %v2177_v12 = vld [vmem:[%s4587_s2 + $0x118] sm:$0xf0] }
  0xab   :  { %v355_v39 = vmax.f32 %v322_v20, 0.0  ;;  %v2832_v52 = vor.u32 %v3068_v37, %v2831_v36  ;;  %v2816_v20 = vor.u32 %v3064_v11, %v2815_v10  ;;  %v2907_v36 = vld [vmem:[%s4587_s2 + $0x134] sm:$0xf]  ;;  %v2193_v37 = vld [vmem:[%s4587_s2 + $0x138] sm:$0xf0]  ;;  %v2292_v42 = vor.u32 %v2931_v27, %v2289_v4 }
  0xac   :  { %1747 = vmatpush.bf16.msra.mxu2 %v2616_v63  ;;  %1771 = vmatpush.bf16.msrb.mxu0 %v2760_v0  ;;  %v2065_v63 = vld [vmem:[%s4587_s2 + $0x38] sm:$0xf0]  ;;  %v2911_v0 = vld [vmem:[%s4587_s2 + $0x154] sm:$0xf]  ;;  %v2196_v46 = vor.u32 %v2907_v36, %v2193_v37 }
  0xad   :  { %v3964_v56 = vpack.c.bf16 %v355_v39, %v355_v39  ;;  %v2212_v30 = vor.u32 %v2911_v0, %v2209_v2  ;;  %v2808_v39 = vor.u32 %v3062_v23, %v2807_v22  ;;  %v2887_v43 = vld [vmem:[%s4587_s2 + $0x94] sm:$0xf]  ;;  %v2188_v2 = vor.u32 %v2905_v54, %v2185_v57  ;;  %v2417_v10 = vld [vmem:[%s4587_s2 + $0x2f8] sm:$0xf0]  ;;  %v2901_v23 = vld [vmem:[%s4587_s2 + $0x104] sm:$0xf] }
  0xae   :  { %1780 = vmatpush.bf16.msra.mxu1 %v2856_v58  ;;  %1760 = vmatpush.bf16.msrb.mxu3 %v2680_v13  ;;  %v2893_v58 = vld [vmem:[%s4587_s2 + $0xc4] sm:$0xf]  ;;  %v2068_v13 = vor.u32 %v2875_v62, %v2065_v63  ;;  %v2105_v63 = vld [vmem:[%s4587_s2 + $0x88] sm:$0xf0]  ;;  %v2903_v11 = vld [vmem:[%s4587_s2 + $0x114] sm:$0xf] }
  0xaf   :  { %1748 = vmatmul.bf16.vlgmr.msra.gmra.mxu2 %v3904_v18  ;;  %v2140_v8 = vor.u32 %v2893_v58, %v2137_v59  ;;  %v2947_v59 = vld [vmem:[%s4587_s2 + $0x274] sm:$0xf]  ;;  %v2885_v62 = vld [vmem:[%s4587_s2 + $0x84] sm:$0xf]  ;;  %v2337_v27 = vld [vmem:[%s4587_s2 + $0x258] sm:$0xf0] }
  0xb0   :  { %1792 = vmatpush.bf16.msrb.mxu2 %v2100_v9  ;;  %1772 = vmatpush.bf16.msrb.mxu0 %v2752_v19  ;;  %v341_v9 = vpop.f32.mrf.mxu0  ;;  %v2201_v19 = vld [vmem:[%s4587_s2 + $0x148] sm:$0xf0]  ;;  %v2108_v35 = vor.u32 %v2885_v62, %v2105_v63  ;;  %v2257_v36 = vld [vmem:[%s4587_s2 + $0x1b8] sm:$0xf0]  ;;  %v2957_v54 = vld [vmem:[%s4587_s2 + $0x2c4] sm:$0xf] }
  0xb1   :  { %1761 = vmatmul.bf16.vlgmr.msrb.gmra.mxu3 %v3915_v24  ;;  %v2204_v29 = vor.u32 %v2909_v17, %v2201_v19  ;;  %v2180_v17 = vor.u32 %v2903_v11, %v2177_v12  ;;  %v2265_v19 = vld [vmem:[%s4587_s2 + $0x1c8] sm:$0xf0]  ;;  %v2973_v11 = vld [vmem:[%s4587_s2 + $0x344] sm:$0xf] }
  0xb2   :  { %1781 = vmatpush.bf16.msra.mxu1 %v2848_v15  ;;  %1805 = vmatpush.bf16.msra.mxu3 %v2164_v16  ;;  %v342_v15 = vadd.f32 %v341_v9, %v66_v3  ;;  %v2057_v16 = vld [vmem:[%s4587_s2 + $0x28] sm:$0xf0]  ;;  %v2927_v3 = vld [vmem:[%s4587_s2 + $0x1d4] sm:$0xf] }
  0xb3   :  { %v2060_v28 = vor.u32 %v2873_v14, %v2057_v16  ;;  %v2393_v57 = vld [vmem:[%s4587_s2 + $0x2c8] sm:$0xf0] }
  0xb4   :  { %1793 = vmatpush.bf16.msrb.mxu2 %v2092_v25  ;;  %1773 = vmatpush.bf16.msrb.mxu0 %v2744_v41  ;;  %v2889_v25 = vld [vmem:[%s4587_s2 + $0xa4] sm:$0xf]  ;;  %v2396_v63 = vor.u32 %v2957_v54, %v2393_v57  ;;  %v2457_v12 = vld [vmem:[%s4587_s2 + $0x348] sm:$0xf0]  ;;  %v2529_v54 = vld [vmem:[%s4587_s2 + $0x3d8] sm:$0xf0] }
  0xb5   :  { %v2124_v41 = vor.u32 %v2889_v25, %v2121_v26  ;;  %v2169_v25 = vld [vmem:[%s4587_s2 + $0x108] sm:$0xf0]  ;;  %v2943_v26 = vld [vmem:[%s4587_s2 + $0x254] sm:$0xf] }
  0xb6   :  { %1782 = vmatpush.bf16.msra.mxu1 %v2840_v33  ;;  %1806 = vmatpush.bf16.msra.mxu3 %v2156_v34  ;;  %v2049_v33 = vld [vmem:[%s4587_s2 + $0x18] sm:$0xf0]  ;;  %v356_v34 = vmax.f32 %v342_v15, 0.0  ;;  %v2925_v15 = vld [vmem:[%s4587_s2 + $0x1c4] sm:$0xf]  ;;  %v2340_v37 = vor.u32 %v2943_v26, %v2337_v27 }
  0xb7   :  { %1774 = vmatmul.bf16.vlgmr.msrb.gmra.mxu0 %v3964_v56  ;;  %v2268_v4 = vor.u32 %v2925_v15, %v2265_v19  ;;  %v2953_v15 = vld [vmem:[%s4587_s2 + $0x2a4] sm:$0xf]  ;;  %v2460_v19 = vor.u32 %v2973_v11, %v2457_v12  ;;  %v2449_v26 = vld [vmem:[%s4587_s2 + $0x338] sm:$0xf0]  ;;  %v2425_v12 = vld [vmem:[%s4587_s2 + $0x308] sm:$0xf0] }
  0xb8   :  { %1794 = vmatpush.bf16.msrb.mxu2 %v2084_v44  ;;  %1818 = vmatpush.bf16.msra.mxu0 %v2228_v45  ;;  %v2113_v44 = vld [vmem:[%s4587_s2 + $0x98] sm:$0xf0]  ;;  %v2052_v45 = vor.u32 %v2871_v32, %v2049_v33  ;;  %v2172_v33 = vor.u32 %v2901_v23, %v2169_v25  ;;  %v2971_v25 = vld [vmem:[%s4587_s2 + $0x334] sm:$0xf]  ;;  %v2965_v11 = vld [vmem:[%s4587_s2 + $0x304] sm:$0xf] }
  0xb9   :  { %v2116_v58 = vor.u32 %v2887_v43, %v2113_v44  ;;  %v2329_v43 = vld [vmem:[%s4587_s2 + $0x248] sm:$0xf0]  ;;  %v2305_v23 = vld [vmem:[%s4587_s2 + $0x218] sm:$0xf0] }
  0xba   :  { %1783 = vmatpush.bf16.msra.mxu1 %v2832_v52  ;;  %1807 = vmatpush.bf16.msra.mxu3 %v2148_v53  ;;  %v4058_v52 = vpack.c.bf16 %v356_v34, %v356_v34  ;;  %v2041_v53 = vld [vmem:[%s4587_s2 + $0x8] sm:$0xf0]  ;;  %v2923_v34 = vld [vmem:[%s4587_s2 + $0x1b4] sm:$0xf] }
  0xbb   :  { %v2044_v0 = vor.u32 %v2869_v51, %v2041_v53  ;;  %v2473_v44 = vld [vmem:[%s4587_s2 + $0x368] sm:$0xf0] }
  0xbc   :  { %1795 = vmatpush.bf16.msrb.mxu2 %v2076_v60  ;;  %1819 = vmatpush.bf16.msra.mxu0 %v2220_v61  ;;  %v2353_v60 = vld [vmem:[%s4587_s2 + $0x278] sm:$0xf0]  ;;  %v2284_v61 = vor.u32 %v2929_v49, %v2281_v50  ;;  %v2921_v49 = vld [vmem:[%s4587_s2 + $0x1a4] sm:$0xf]  ;;  %v2249_v50 = vld [vmem:[%s4587_s2 + $0x1a8] sm:$0xf0] }
  0xbd   :  { %v2356_v9 = vor.u32 %v2947_v59, %v2353_v60  ;;  %v2321_v59 = vld [vmem:[%s4587_s2 + $0x238] sm:$0xf0]  ;;  %v2975_v60 = vld [vmem:[%s4587_s2 + $0x354] sm:$0xf]  ;;  %v2252_v62 = vor.u32 %v2921_v49, %v2249_v50 }
  0xbe   :  { %1784 = vmatpush.bf16.msra.mxu1 %v2824_v7  ;;  %1808 = vmatpush.bf16.msra.mxu3 %v2140_v8  ;;  %v2273_v7 = vld [vmem:[%s4587_s2 + $0x1d8] sm:$0xf0]  ;;  %v2963_v8 = vld [vmem:[%s4587_s2 + $0x2f4] sm:$0xf] }
  0xbf   :  { %v2276_v14 = vor.u32 %v2927_v3, %v2273_v7  ;;  %v2420_v16 = vor.u32 %v2963_v8, %v2417_v10  ;;  %v2385_v8 = vld [vmem:[%s4587_s2 + $0x2b8] sm:$0xf0]  ;;  %v2313_v10 = vld [vmem:[%s4587_s2 + $0x228] sm:$0xf0] }
  0xc0   :  { %1796 = vmatpush.bf16.msrb.mxu2 %v2068_v13  ;;  %1820 = vmatpush.bf16.msra.mxu0 %v2212_v30  ;;  %v2945_v13 = vld [vmem:[%s4587_s2 + $0x264] sm:$0xf]  ;;  %v2345_v30 = vld [vmem:[%s4587_s2 + $0x268] sm:$0xf0] }
  0xc1   :  { %v2348_v22 = vor.u32 %v2945_v13, %v2345_v30  ;;  %v2917_v13 = vld [vmem:[%s4587_s2 + $0x184] sm:$0xf] }
  0xc2   :  { %1785 = vmatpush.bf16.msra.mxu1 %v2816_v20  ;;  %1809 = vmatpush.bf16.msra.mxu3 %v2132_v21  ;;  %v2961_v20 = vld [vmem:[%s4587_s2 + $0x2e4] sm:$0xf]  ;;  %v2409_v21 = vld [vmem:[%s4587_s2 + $0x2e8] sm:$0xf0] }
  0xc3   :  { %v2412_v32 = vor.u32 %v2961_v20, %v2409_v21  ;;  %v2995_v20 = vld [vmem:[%s4587_s2 + $0x3f4] sm:$0xf]  ;;  %v2545_v21 = vld [vmem:[%s4587_s2 + $0x3f8] sm:$0xf0] }
  0xc4   :  { %1797 = vmatpush.bf16.msrb.mxu2 %v2060_v28  ;;  %1821 = vmatpush.bf16.msra.mxu0 %v2204_v29  ;;  %v2979_v28 = vld [vmem:[%s4587_s2 + $0x374] sm:$0xf]  ;;  %v2481_v29 = vld [vmem:[%s4587_s2 + $0x378] sm:$0xf0] }
  0xc6   :  { %1786 = vmatpush.bf16.msra.mxu1 %v2808_v39  ;;  %1810 = vmatpush.bf16.msra.mxu3 %v2124_v41  ;;  %v2484_v39 = vor.u32 %v2979_v28, %v2481_v29  ;;  %v2401_v41 = vld [vmem:[%s4587_s2 + $0x2d8] sm:$0xf0]  ;;  %v2548_v29 = vor.u32 %v2995_v20, %v2545_v21  ;;  %v3023_v21 = vld [vmem:[%s4587_s2 + $0x4d4] sm:$0xf] }
  0xc7   :  { %v2513_v20 = vld [vmem:[%s4587_s2 + $0x3b8] sm:$0xf0] }
  0xc8   :  { %1798 = vmatpush.bf16.msrb.mxu2 %v2052_v45  ;;  %1822 = vmatpush.bf16.msra.mxu0 %v2196_v46  ;;  %v2260_v45 = vor.u32 %v2923_v34, %v2257_v36  ;;  %v2452_v34 = vor.u32 %v2971_v25, %v2449_v26  ;;  %v2993_v36 = vld [vmem:[%s4587_s2 + $0x3e4] sm:$0xf]  ;;  %v2585_v26 = vld [vmem:[%s4587_s2 + $0x448] sm:$0xf0] }
  0xc9   :  { %1787 = vmatmul.bf16.vlgmr.msra.gmra.mxu1 %v4058_v52  ;;  %v3005_v25 = vld [vmem:[%s4587_s2 + $0x444] sm:$0xf] }
  0xca   :  { %1831 = vmatpush.bf16.msrb.mxu1 %v2292_v42  ;;  %1811 = vmatpush.bf16.msra.mxu3 %v2116_v58  ;;  %v2941_v42 = vld [vmem:[%s4587_s2 + $0x244] sm:$0xf]  ;;  %v2939_v58 = vld [vmem:[%s4587_s2 + $0x234] sm:$0xf] }
  0xcb   :  { %v2332_v51 = vor.u32 %v2941_v42, %v2329_v43  ;;  %v2324_v3 = vor.u32 %v2939_v58, %v2321_v59  ;;  %v2441_v42 = vld [vmem:[%s4587_s2 + $0x328] sm:$0xf0]  ;;  %v3011_v43 = vld [vmem:[%s4587_s2 + $0x474] sm:$0xf]  ;;  %v2673_v59 = vld [vmem:[%s4587_s2 + $0x4f8] sm:$0xf0] }
  0xcc   :  { %1799 = vmatpush.bf16.msrb.mxu2 %v2044_v0  ;;  %1823 = vmatpush.bf16.msra.mxu0 %v2188_v2  ;;  %v2919_v0 = vld [vmem:[%s4587_s2 + $0x194] sm:$0xf]  ;;  %v2241_v2 = vld [vmem:[%s4587_s2 + $0x198] sm:$0xf0] }
  0xcd   :  { %v3027_v58 = vld [vmem:[%s4587_s2 + $0x4f4] sm:$0xf] }
  0xce   :  { %1832 = vmatpush.bf16.msrb.mxu1 %v2284_v61  ;;  %1812 = vmatpush.bf16.msra.mxu3 %v2108_v35  ;;  %v2465_v61 = vld [vmem:[%s4587_s2 + $0x358] sm:$0xf0]  ;;  %v2244_v35 = vor.u32 %v2919_v0, %v2241_v2  ;;  %v2676_v2 = vor.u32 %v3027_v58, %v2673_v59  ;;  %v2981_v59 = vld [vmem:[%s4587_s2 + $0x384] sm:$0xf] }
  0xcf   :  { %1800 = vmatmul.bf16.vlgmr.msrb.gmra.mxu2 %v3640_v38  ;;  %v2959_v38 = vld [vmem:[%s4587_s2 + $0x2d4] sm:$0xf]  ;;  %v2468_v7 = vor.u32 %v2975_v60, %v2465_v61  ;;  %v2433_v61 = vld [vmem:[%s4587_s2 + $0x318] sm:$0xf0] }
  0xd0   :  { %1844 = vmatpush.bf16.msra.mxu2 %v2356_v9  ;;  %1824 = vmatpush.bf16.msra.mxu0 %v2180_v17  ;;  %v2404_v46 = vor.u32 %v2959_v38, %v2401_v41  ;;  %v2937_v9 = vld [vmem:[%s4587_s2 + $0x224] sm:$0xf]  ;;  %v2297_v38 = vld [vmem:[%s4587_s2 + $0x208] sm:$0xf0]  ;;  %v2967_v60 = vld [vmem:[%s4587_s2 + $0x314] sm:$0xf] }
  0xd1   :  { %1813 = vmatmul.bf16.vlgmr.msra.gmra.mxu3 %v3668_v55  ;;  %v2977_v55 = vld [vmem:[%s4587_s2 + $0x364] sm:$0xf]  ;;  %v2316_v17 = vor.u32 %v2937_v9, %v2313_v10  ;;  %v2665_v10 = vld [vmem:[%s4587_s2 + $0x4e8] sm:$0xf0] }
  0xd2   :  { %1833 = vmatpush.bf16.msrb.mxu1 %v2276_v14  ;;  %1857 = vmatpush.bf16.msrb.mxu3 %v2420_v16  ;;  %v2476_v53 = vor.u32 %v2977_v55, %v2473_v44  ;;  %v2233_v14 = vld [vmem:[%s4587_s2 + $0x188] sm:$0xf0]  ;;  %v2969_v41 = vld [vmem:[%s4587_s2 + $0x324] sm:$0xf]  ;;  %v2609_v55 = vld [vmem:[%s4587_s2 + $0x478] sm:$0xf0] }
  0xd3   :  { %v2377_v16 = vld [vmem:[%s4587_s2 + $0x2a8] sm:$0xf0]  ;;  %v2236_v27 = vor.u32 %v2917_v13, %v2233_v14  ;;  %v2444_v50 = vor.u32 %v2969_v41, %v2441_v42  ;;  %v2612_v57 = vor.u32 %v3011_v43, %v2609_v55  ;;  %v3025_v9 = vld [vmem:[%s4587_s2 + $0x4e4] sm:$0xf]  ;;  %v2593_v13 = vld [vmem:[%s4587_s2 + $0x458] sm:$0xf0] }
  0xd4   :  { %1845 = vmatpush.bf16.msra.mxu2 %v2348_v22  ;;  %1825 = vmatpush.bf16.msra.mxu0 %v2172_v33  ;;  %v2935_v22 = vld [vmem:[%s4587_s2 + $0x214] sm:$0xf]  ;;  %v2380_v28 = vor.u32 %v2953_v15, %v2377_v16  ;;  %v2737_v14 = vld [vmem:[%s4587_s2 + $0x578] sm:$0xf0]  ;;  %v2668_v16 = vor.u32 %v3025_v9, %v2665_v10 }
  0xd5   :  { %v2308_v33 = vor.u32 %v2935_v22, %v2305_v23  ;;  %v2657_v23 = vld [vmem:[%s4587_s2 + $0x4d8] sm:$0xf0]  ;;  %v3039_v41 = vld [vmem:[%s4587_s2 + $0x554] sm:$0xf] }
  0xd6   :  { %1834 = vmatpush.bf16.msrb.mxu1 %v2268_v4  ;;  %1858 = vmatpush.bf16.msrb.mxu3 %v2412_v32  ;;  %v2951_v4 = vld [vmem:[%s4587_s2 + $0x294] sm:$0xf]  ;;  %v2369_v32 = vld [vmem:[%s4587_s2 + $0x298] sm:$0xf0] }
  0xd7   :  { %1826 = vmatmul.bf16.vlgmr.msra.gmra.mxu0 %v3686_v1  ;;  %v2955_v1 = vld [vmem:[%s4587_s2 + $0x2b4] sm:$0xf]  ;;  %v2372_v44 = vor.u32 %v2951_v4, %v2369_v32  ;;  %v2588_v4 = vor.u32 %v3005_v25, %v2585_v26  ;;  %v2985_v32 = vld [vmem:[%s4587_s2 + $0x3a4] sm:$0xf]  ;;  %v2721_v42 = vld [vmem:[%s4587_s2 + $0x558] sm:$0xf0] }
  0xd8   :  { %1846 = vmatpush.bf16.msra.mxu2 %v2340_v37  ;;  %1870 = vmatpush.bf16.msrb.mxu0 %v2484_v39  ;;  %v2388_v30 = vor.u32 %v2955_v1, %v2385_v8  ;;  %v2537_v37 = vld [vmem:[%s4587_s2 + $0x3e8] sm:$0xf0]  ;;  %v2933_v39 = vld [vmem:[%s4587_s2 + $0x204] sm:$0xf]  ;;  %v2436_v1 = vor.u32 %v2967_v60, %v2433_v61  ;;  %v2705_v9 = vld [vmem:[%s4587_s2 + $0x538] sm:$0xf0] }
  0xd9   :  { %v2300_v49 = vor.u32 %v2933_v39, %v2297_v38  ;;  %v3003_v39 = vld [vmem:[%s4587_s2 + $0x434] sm:$0xf]  ;;  %v2577_v38 = vld [vmem:[%s4587_s2 + $0x438] sm:$0xf0] }
  0xda   :  { %1835 = vmatpush.bf16.msrb.mxu1 %v2260_v45  ;;  %1859 = vmatpush.bf16.msrb.mxu3 %v2404_v46  ;;  %v2540_v45 = vor.u32 %v2993_v36, %v2537_v37  ;;  %v2949_v46 = vld [vmem:[%s4587_s2 + $0x284] sm:$0xf]  ;;  %v2649_v37 = vld [vmem:[%s4587_s2 + $0x4c8] sm:$0xf0] }
  0xdc   :  { %1847 = vmatpush.bf16.msra.mxu2 %v2332_v51  ;;  %1871 = vmatpush.bf16.msrb.mxu0 %v2476_v53  ;;  %v2361_v51 = vld [vmem:[%s4587_s2 + $0x288] sm:$0xf0]  ;;  %v2991_v53 = vld [vmem:[%s4587_s2 + $0x3d4] sm:$0xf] }
  0xdd   :  { %v2532_v0 = vor.u32 %v2991_v53, %v2529_v54  ;;  %v2569_v53 = vld [vmem:[%s4587_s2 + $0x428] sm:$0xf0]  ;;  %v3037_v54 = vld [vmem:[%s4587_s2 + $0x544] sm:$0xf] }
  0xde   :  { %1836 = vmatpush.bf16.msrb.mxu1 %v2252_v62  ;;  %1860 = vmatpush.bf16.msrb.mxu3 %v2396_v63  ;;  %v2601_v62 = vld [vmem:[%s4587_s2 + $0x468] sm:$0xf0]  ;;  %v2364_v63 = vor.u32 %v2949_v46, %v2361_v51  ;;  %v2497_v46 = vld [vmem:[%s4587_s2 + $0x398] sm:$0xf0]  ;;  %v3001_v51 = vld [vmem:[%s4587_s2 + $0x424] sm:$0xf] }
  0xdf   :  { %v2572_v61 = vor.u32 %v3001_v51, %v2569_v53 }
  0xe0   :  { %1848 = vmatpush.bf16.msra.mxu2 %v2324_v3  ;;  %1872 = vmatpush.bf16.msrb.mxu0 %v2468_v7  ;;  %v2989_v3 = vld [vmem:[%s4587_s2 + $0x3c4] sm:$0xf]  ;;  %v2521_v7 = vld [vmem:[%s4587_s2 + $0x3c8] sm:$0xf0] }
  0xe1   :  { %v2524_v15 = vor.u32 %v2989_v3, %v2521_v7  ;;  %v2801_v3 = vld [vmem:[%s4587_s2 + $0x5f8] sm:$0xf0]  ;;  %v2999_v7 = vld [vmem:[%s4587_s2 + $0x414] sm:$0xf] }
  0xe2   :  { %1837 = vmatpush.bf16.msrb.mxu1 %v2244_v35  ;;  %1861 = vmatpush.bf16.msrb.mxu3 %v2388_v30  ;;  %v3007_v35 = vld [vmem:[%s4587_s2 + $0x454] sm:$0xf] }
  0xe3   :  { %v3043_v30 = vld [vmem:[%s4587_s2 + $0x574] sm:$0xf] }
  0xe4   :  { %1849 = vmatpush.bf16.msra.mxu2 %v2316_v17  ;;  %1873 = vmatpush.bf16.msrb.mxu0 %v2460_v19  ;;  %v2428_v17 = vor.u32 %v2965_v11, %v2425_v12  ;;  %v2596_v19 = vor.u32 %v3007_v35, %v2593_v13  ;;  %v2740_v22 = vor.u32 %v3043_v30, %v2737_v14  ;;  %v3015_v35 = vld [vmem:[%s4587_s2 + $0x494] sm:$0xf]  ;;  %v2625_v13 = vld [vmem:[%s4587_s2 + $0x498] sm:$0xf0] }
  0xe6   :  { %1838 = vmatpush.bf16.msrb.mxu1 %v2236_v27  ;;  %1862 = vmatpush.bf16.msrb.mxu3 %v2380_v28  ;;  %v3041_v27 = vld [vmem:[%s4587_s2 + $0x564] sm:$0xf] }
  0xe8   :  { %1850 = vmatpush.bf16.msra.mxu2 %v2308_v33  ;;  %1874 = vmatpush.bf16.msrb.mxu0 %v2452_v34  ;;  %v2505_v33 = vld [vmem:[%s4587_s2 + $0x3a8] sm:$0xf0]  ;;  %v3021_v34 = vld [vmem:[%s4587_s2 + $0x4c4] sm:$0xf] }
  0xe9   :  { %1839 = vmatmul.bf16.vlgmr.msrb.gmra.mxu1 %v3732_v31  ;;  %v3009_v31 = vld [vmem:[%s4587_s2 + $0x464] sm:$0xf]  ;;  %v2508_v43 = vor.u32 %v2985_v32, %v2505_v33  ;;  %v2652_v55 = vor.u32 %v3021_v34, %v2649_v37  ;;  %v2785_v32 = vld [vmem:[%s4587_s2 + $0x5d8] sm:$0xf0]  ;;  %v3031_v33 = vld [vmem:[%s4587_s2 + $0x514] sm:$0xf] }
  0xea   :  { %1883 = vmatpush.bf16.msra.mxu1 %v2548_v29  ;;  %1863 = vmatpush.bf16.msrb.mxu3 %v2372_v44  ;;  %v2604_v8 = vor.u32 %v3009_v31, %v2601_v62  ;;  %v2660_v29 = vor.u32 %v3023_v21, %v2657_v23  ;;  %v2580_v44 = vor.u32 %v3003_v39, %v2577_v38  ;;  %v2489_v31 = vld [vmem:[%s4587_s2 + $0x388] sm:$0xf0]  ;;  %v3017_v62 = vld [vmem:[%s4587_s2 + $0x4a4] sm:$0xf]  ;;  %v3075_v21 = vld [vmem:[%s4587_s2 + $0x674] sm:$0xf] }
  0xeb   :  { %v2492_v10 = vor.u32 %v2981_v59, %v2489_v31  ;;  %v2628_v23 = vor.u32 %v3015_v35, %v2625_v13  ;;  %v2689_v34 = vld [vmem:[%s4587_s2 + $0x518] sm:$0xf0]  ;;  %v3049_v31 = vld [vmem:[%s4587_s2 + $0x5a4] sm:$0xf] }
  0xec   :  { %1851 = vmatpush.bf16.msra.mxu2 %v2300_v49  ;;  %1875 = vmatpush.bf16.msrb.mxu0 %v2444_v50  ;;  %v3019_v49 = vld [vmem:[%s4587_s2 + $0x4b4] sm:$0xf]  ;;  %v2641_v50 = vld [vmem:[%s4587_s2 + $0x4b8] sm:$0xf0]  ;;  %v2692_v38 = vor.u32 %v3031_v33, %v2689_v34 }
  0xed   :  { %v2644_v60 = vor.u32 %v3019_v49, %v2641_v50  ;;  %v2849_v49 = vld [vmem:[%s4587_s2 + $0x658] sm:$0xf0] }
  0xee   :  { %1884 = vmatpush.bf16.msra.mxu1 %v2540_v45  ;;  %1864 = vmatpush.bf16.msrb.mxu3 %v2364_v63  ;;  %v2983_v45 = vld [vmem:[%s4587_s2 + $0x394] sm:$0xf]  ;;  %v2633_v63 = vld [vmem:[%s4587_s2 + $0x4a8] sm:$0xf0] }
  0xef   :  { %1852 = vmatmul.bf16.vlgmr.msra.gmra.mxu2 %v3745_v40  ;;  %v2987_v40 = vld [vmem:[%s4587_s2 + $0x3b4] sm:$0xf]  ;;  %v2500_v58 = vor.u32 %v2983_v45, %v2497_v46  ;;  %v2636_v11 = vor.u32 %v3017_v62, %v2633_v63 }
  0xf0   :  { %1896 = vmatpush.bf16.msrb.mxu2 %v2612_v57  ;;  %1876 = vmatpush.bf16.msrb.mxu0 %v2436_v1  ;;  %v2516_v28 = vor.u32 %v2987_v40, %v2513_v20  ;;  %v2713_v57 = vld [vmem:[%s4587_s2 + $0x548] sm:$0xf0]  ;;  %v2561_v1 = vld [vmem:[%s4587_s2 + $0x418] sm:$0xf0]  ;;  %v3033_v40 = vld [vmem:[%s4587_s2 + $0x524] sm:$0xf] }
  0xf1   :  { %1865 = vmatmul.bf16.vlgmr.msrb.gmra.mxu3 %v3789_v5  ;;  %v2729_v5 = vld [vmem:[%s4587_s2 + $0x568] sm:$0xf0]  ;;  %v2564_v30 = vor.u32 %v2999_v7, %v2561_v1  ;;  %v3071_v46 = vld [vmem:[%s4587_s2 + $0x654] sm:$0xf] }
  0xf2   :  { %1885 = vmatpush.bf16.msra.mxu1 %v2532_v0  ;;  %1909 = vmatpush.bf16.msra.mxu3 %v2676_v2  ;;  %v2732_v36 = vor.u32 %v3041_v27, %v2729_v5  ;;  %v2716_v0 = vor.u32 %v3037_v54, %v2713_v57  ;;  %v3059_v2 = vld [vmem:[%s4587_s2 + $0x5f4] sm:$0xf]  ;;  %v2697_v20 = vld [vmem:[%s4587_s2 + $0x528] sm:$0xf0]  ;;  %v3013_v5 = vld [vmem:[%s4587_s2 + $0x484] sm:$0xf]  ;;  %v2852_v53 = vor.u32 %v3071_v46, %v2849_v49 }
  0xf3   :  { %v2804_v12 = vor.u32 %v3059_v2, %v2801_v3  ;;  %v2700_v27 = vor.u32 %v3033_v40, %v2697_v20  ;;  %v3051_v54 = vld [vmem:[%s4587_s2 + $0x5b4] sm:$0xf]  ;;  %v2769_v57 = vld [vmem:[%s4587_s2 + $0x5b8] sm:$0xf0] }
  0xf4   :  { %1897 = vmatpush.bf16.msrb.mxu2 %v2604_v8  ;;  %1877 = vmatpush.bf16.msrb.mxu0 %v2428_v17  ;;  %v3035_v8 = vld [vmem:[%s4587_s2 + $0x534] sm:$0xf]  ;;  %v2997_v17 = vld [vmem:[%s4587_s2 + $0x404] sm:$0xf]  ;;  %v2817_v40 = vld [vmem:[%s4587_s2 + $0x618] sm:$0xf0] }
  0xf5   :  { %v2708_v14 = vor.u32 %v3035_v8, %v2705_v9  ;;  %v3067_v63 = vld [vmem:[%s4587_s2 + $0x634] sm:$0xf]  ;;  %v2753_v8 = vld [vmem:[%s4587_s2 + $0x598] sm:$0xf0] }
  0xf6   :  { %1886 = vmatpush.bf16.msra.mxu1 %v2524_v15  ;;  %1910 = vmatpush.bf16.msra.mxu3 %v2668_v16  ;;  %v3057_v15 = vld [vmem:[%s4587_s2 + $0x5e4] sm:$0xf]  ;;  %v2793_v16 = vld [vmem:[%s4587_s2 + $0x5e8] sm:$0xf0]  ;;  %v3047_v1 = vld [vmem:[%s4587_s2 + $0x594] sm:$0xf] }
  0xf7   :  { %1878 = vmatmul.bf16.vlgmr.msrb.gmra.mxu0 %v3791_v6  ;;  %v2724_v6 = vor.u32 %v3039_v41, %v2721_v42  ;;  %v2796_v25 = vor.u32 %v3057_v15, %v2793_v16  ;;  %v3053_v41 = vld [vmem:[%s4587_s2 + $0x5c4] sm:$0xf]  ;;  %v2756_v35 = vor.u32 %v3047_v1, %v2753_v8  ;;  %v2745_v16 = vld [vmem:[%s4587_s2 + $0x588] sm:$0xf0] }
  0xf8   :  { %1898 = vmatpush.bf16.msrb.mxu2 %v2596_v19  ;;  %1922 = vmatpush.bf16.msra.mxu0 %v2740_v22  ;;  %v2553_v19 = vld [vmem:[%s4587_s2 + $0x408] sm:$0xf0]  ;;  %v2865_v22 = vld [vmem:[%s4587_s2 + $0x678] sm:$0xf0]  ;;  %v3045_v15 = vld [vmem:[%s4587_s2 + $0x584] sm:$0xf] }
  0xf9   :  { %v2556_v26 = vor.u32 %v2997_v17, %v2553_v19  ;;  %v3063_v19 = vld [vmem:[%s4587_s2 + $0x614] sm:$0xf] }
  0xfa   :  { %1887 = vmatpush.bf16.msra.mxu1 %v2516_v28  ;;  %1911 = vmatpush.bf16.msra.mxu3 %v2660_v29  ;;  %v2617_v28 = vld [vmem:[%s4587_s2 + $0x488] sm:$0xf0]  ;;  %v3055_v29 = vld [vmem:[%s4587_s2 + $0x5d4] sm:$0xf] }
  0xfb   :  { %v2620_v37 = vor.u32 %v3013_v5, %v2617_v28  ;;  %v2788_v39 = vor.u32 %v3055_v29, %v2785_v32 }
  0xfc   :  { %1899 = vmatpush.bf16.msrb.mxu2 %v2588_v4  ;;  %1923 = vmatpush.bf16.msra.mxu0 %v2732_v36  ;;  %v2868_v4 = vor.u32 %v3075_v21, %v2865_v22  ;;  %v3073_v36 = vld [vmem:[%s4587_s2 + $0x664] sm:$0xf]  ;;  %v2748_v21 = vor.u32 %v3045_v15, %v2745_v16 }
  0xfe   :  { %1888 = vmatpush.bf16.msra.mxu1 %v2508_v43  ;;  %1912 = vmatpush.bf16.msra.mxu3 %v2652_v55  ;;  %v2777_v43 = vld [vmem:[%s4587_s2 + $0x5c8] sm:$0xf0]  ;;  %v3029_v55 = vld [vmem:[%s4587_s2 + $0x504] sm:$0xf] }
  0xff   :  { %v2780_v50 = vor.u32 %v3053_v41, %v2777_v43 }
 0x100   :  { %1900 = vmatpush.bf16.msrb.mxu2 %v2580_v44  ;;  %1924 = vmatpush.bf16.msra.mxu0 %v2724_v6  ;;  %v2681_v44 = vld [vmem:[%s4587_s2 + $0x508] sm:$0xf0]  ;;  %v4514_v6 = vld [vmem:[%s4586_s1 + $0xd1] ss:$8 sm:$0x3] }
 0x101   :  { %v2684_v51 = vor.u32 %v3029_v55, %v2681_v44  ;;  %v579_v59 = vperm.slane %v4514_v6, 0 }
 0x102   :  { %1889 = vmatpush.bf16.msra.mxu1 %v2500_v58  ;;  %1913 = vmatpush.bf16.msra.mxu3 %v2644_v60  ;;  %v2841_v58 = vld [vmem:[%s4587_s2 + $0x648] sm:$0xf0]  ;;  %v2772_v60 = vor.u32 %v3051_v54, %v2769_v57 }
 0x104   :  { %1901 = vmatpush.bf16.msrb.mxu2 %v2572_v61  ;;  %1925 = vmatpush.bf16.msra.mxu0 %v2716_v0  ;;  %v2833_v0 = vld [vmem:[%s4587_s2 + $0x638] sm:$0xf0] }
 0x105   :  { %v2836_v7 = vor.u32 %v3067_v63, %v2833_v0 }
 0x106   :  { %1890 = vmatpush.bf16.msra.mxu1 %v2492_v10  ;;  %1914 = vmatpush.bf16.msra.mxu3 %v2636_v11  ;;  %v1632_v45 = vpop.f32.mrf.mxu1  ;;  %v3065_v10 = vld [vmem:[%s4587_s2 + $0x624] sm:$0xf] }
 0x107   :  { %v1633_v2 = vadd.f32 %v1632_v45, %v579_v59 }
 0x108   :  { %1902 = vmatpush.bf16.msrb.mxu2 %v2564_v30  ;;  %1926 = vmatpush.bf16.msra.mxu0 %v2708_v14 }
 0x109   :  { %1891 = vmatmul.bf16.vlgmr.msra.gmra.mxu1 %v3849_v47  ;;  %v2857_v47 = vld [vmem:[%s4587_s2 + $0x668] sm:$0xf0] }
 0x10a   :  { %1935 = vmatpush.bf16.msrb.mxu1 %v2804_v12  ;;  %1915 = vmatpush.bf16.msra.mxu3 %v2628_v23  ;;  %v2860_v42 = vor.u32 %v3073_v36, %v2857_v47  ;;  %v2820_v23 = vor.u32 %v3063_v19, %v2817_v40 }
 0x10c   :  { %1903 = vmatpush.bf16.msrb.mxu2 %v2556_v26  ;;  %1927 = vmatpush.bf16.msra.mxu0 %v2700_v27  ;;  %v3061_v26 = vld [vmem:[%s4587_s2 + $0x604] sm:$0xf]  ;;  %v2809_v27 = vld [vmem:[%s4587_s2 + $0x608] sm:$0xf0] }
 0x10d   :  { %v2812_v29 = vor.u32 %v3061_v26, %v2809_v27 }
 0x10e   :  { %1936 = vmatpush.bf16.msrb.mxu1 %v2796_v25  ;;  %1916 = vmatpush.bf16.msra.mxu3 %v2620_v37  ;;  %v1634_v62 = vpop.f32.mrf.mxu1 }
 0x10f   :  { %1904 = vmatmul.bf16.vlgmr.msrb.gmra.mxu2 %v3851_v48  ;;  %v3069_v48 = vld [vmem:[%s4587_s2 + $0x644] sm:$0xf] }
 0x110   :  { %1948 = vmatpush.bf16.msra.mxu2 %v2868_v4  ;;  %1928 = vmatpush.bf16.msra.mxu0 %v2692_v38  ;;  %v2844_v61 = vor.u32 %v3069_v48, %v2841_v58  ;;  %v580_v58 = vperm.slane %v4514_v6, 1 }
 0x111   :  { %1917 = vmatmul.bf16.vlgmr.msra.gmra.mxu3 %v3904_v18  ;;  %v2761_v18 = vld [vmem:[%s4587_s2 + $0x5a8] sm:$0xf0] }
 0x112   :  { %1937 = vmatpush.bf16.msrb.mxu1 %v2788_v39  ;;  %v2764_v3 = vor.u32 %v3049_v31, %v2761_v18  ;;  %v1645_v9 = vpop.f32.mrf.mxu2 }
 0x113   :  { %v1646_v11 = vadd.f32 %v1645_v9, %v1633_v2 }
 0x114   :  { %1949 = vmatpush.bf16.msra.mxu2 %v2860_v42  ;;  %1929 = vmatpush.bf16.msra.mxu0 %v2684_v51  ;;  %v1658_v12 = vpop.f32.mrf.mxu3  ;;  %v1671_v13 = vpop.f32.mrf.mxu0 }
 0x115   :  { %v1659_v30 = vadd.f32 %v1658_v12, %v1646_v11 }
 0x116   :  { %1938 = vmatpush.bf16.msrb.mxu1 %v2780_v50  ;;  %v1684_v17 = vpop.f32.mrf.mxu1 }
 0x117   :  { %1930 = vmatmul.bf16.vlgmr.msra.gmra.mxu0 %v3915_v24  ;;  %v2825_v24 = vld [vmem:[%s4587_s2 + $0x628] sm:$0xf0]  ;;  %v1672_v20 = vadd.f32 %v1671_v13, %v1659_v30  ;;  %s3110_s2 = smov [#allocation2]  }
 0x118   :  { %1950 = vmatpush.bf16.msra.mxu2 %v2852_v53  ;;  %v2828_v14 = vor.u32 %v3065_v10, %v2825_v24  ;;  %s2008_s10 = sshll.u32 %s3110_s2, 4  ;;  %s2009_s10 = int_to_ptr.vmem [resolvable:$true] %s2008_s10 }
 0x119   :  { %v1685_v22 = vadd.f32 %v1684_v17, %v1672_v20 }
 0x11a   :  { %1939 = vmatpush.bf16.msrb.mxu1 %v2772_v60  ;;  %v1647_v25 = vpop.f32.mrf.mxu2 }
 0x11c   :  { %1951 = vmatpush.bf16.msra.mxu2 %v2844_v61  ;;  %v1660_v5 = vpop.f32.mrf.mxu3  ;;  %v1673_v28 = vpop.f32.mrf.mxu0 }
 0x11e   :  { %1940 = vmatpush.bf16.msrb.mxu1 %v2764_v3  ;;  %v1686_v4 = vpop.f32.mrf.mxu1 }
 0x120   :  { %1952 = vmatpush.bf16.msra.mxu2 %v2836_v7 }
 0x122   :  { %1941 = vmatpush.bf16.msrb.mxu1 %v2756_v35  ;;  %v1697_v32 = vpop.f32.mrf.mxu2 }
 0x123   :  { %v1698_v33 = vadd.f32 %v1697_v32, %v1685_v22 }
 0x124   :  { %1953 = vmatpush.bf16.msra.mxu2 %v2828_v14  ;;  %v1710_v34 = vpop.f32.mrf.mxu3  ;;  %v1723_v36 = vpop.f32.mrf.mxu0 }
 0x125   :  { %v1711_v47 = vadd.f32 %v1710_v34, %v1698_v33 }
 0x126   :  { %1942 = vmatpush.bf16.msrb.mxu1 %v2748_v21  ;;  %v1736_v37 = vpop.f32.mrf.mxu1 }
 0x127   :  { %v1724_v39 = vadd.f32 %v1723_v36, %v1711_v47 }
 0x128   :  { %1954 = vmatpush.bf16.msra.mxu2 %v2820_v23 }
 0x129   :  { %1943 = vmatmul.bf16.vlgmr.msrb.gmra.mxu1 %v3964_v56  ;;  %v1737_v38 = vadd.f32 %v1736_v37, %v1724_v39 }
 0x12a   :  { %v1699_v41 = vpop.f32.mrf.mxu2 }
 0x12c   :  { %1955 = vmatpush.bf16.msra.mxu2 %v2812_v29  ;;  %v1712_v42 = vpop.f32.mrf.mxu3  ;;  %v1725_v43 = vpop.f32.mrf.mxu0 }
 0x12e   :  { %v1738_v55 = vpop.f32.mrf.mxu1 }
 0x12f   :  { %1956 = vmatmul.bf16.vlgmr.msra.gmra.mxu2 %v4058_v52 }
 0x132   :  { %v1749_v44 = vpop.f32.mrf.mxu2 }
 0x133   :  { %v1750_v45 = vadd.f32 %v1749_v44, %v1737_v38 }
 0x134   :  { %v1762_v46 = vpop.f32.mrf.mxu3  ;;  %v1775_v49 = vpop.f32.mrf.mxu0 }
 0x135   :  { %v1763_v56 = vadd.f32 %v1762_v46, %v1750_v45 }
 0x137   :  { %v1776_v50 = vadd.f32 %v1775_v49, %v1763_v56 }
 0x13a   :  { %v1751_v51 = vpop.f32.mrf.mxu2 }
 0x13c   :  { %v1764_v53 = vpop.f32.mrf.mxu3  ;;  %v1777_v54 = vpop.f32.mrf.mxu0 }
 0x146   :  { %v1788_v52 = vpop.f32.mrf.mxu1 }
 0x147   :  { %v1789_v57 = vadd.f32 %v1788_v52, %v1776_v50 }
 0x149   :  { %v1962_v4 = vsel %vm1961_vm1, %v1789_v57, -inf }
 0x14e   :  { %v1790_v48 = vpop.f32.mrf.mxu1 }
 0x152   :  { %v1801_v59 = vpop.f32.mrf.mxu2 }
 0x153   :  { %v1802_v60 = vadd.f32 %v1801_v59, %v580_v58 }
 0x154   :  { %v1814_v61 = vpop.f32.mrf.mxu3  ;;  %v1827_v31 = vpop.f32.mrf.mxu0 }
 0x155   :  { %v1815_v18 = vadd.f32 %v1814_v61, %v1802_v60 }
 0x157   :  { %v1828_v62 = vadd.f32 %v1827_v31, %v1815_v18 }
 0x15a   :  { %v1803_v63 = vpop.f32.mrf.mxu2 }
 0x15c   :  { %v1816_v0 = vpop.f32.mrf.mxu3  ;;  %v1829_v2 = vpop.f32.mrf.mxu0 }
 0x166   :  { %v1840_v3 = vpop.f32.mrf.mxu1 }
 0x167   :  { %v1841_v14 = vadd.f32 %v1840_v3, %v1828_v62 }
 0x16e   :  { %v1842_v7 = vpop.f32.mrf.mxu1 }
 0x172   :  { %v1853_v1 = vpop.f32.mrf.mxu2 }
 0x173   :  { %v1854_v15 = vadd.f32 %v1853_v1, %v1841_v14 }
 0x174   :  { %v1866_v8 = vpop.f32.mrf.mxu3  ;;  %v1879_v9 = vpop.f32.mrf.mxu0 }
 0x175   :  { %v1867_v17 = vadd.f32 %v1866_v8, %v1854_v15 }
 0x177   :  { %v1880_v20 = vadd.f32 %v1879_v9, %v1867_v17 }
 0x17a   :  { %v1855_v10 = vpop.f32.mrf.mxu2 }
 0x17c   :  { %v1868_v24 = vpop.f32.mrf.mxu3  ;;  %v1881_v11 = vpop.f32.mrf.mxu0 }
 0x186   :  { %v1892_v12 = vpop.f32.mrf.mxu1 }
 0x187   :  { %v1893_v21 = vadd.f32 %v1892_v12, %v1880_v20 }
 0x18e   :  { %v1894_v35 = vpop.f32.mrf.mxu1 }
 0x192   :  { %v1905_v6 = vpop.f32.mrf.mxu2 }
 0x193   :  { %v1906_v22 = vadd.f32 %v1905_v6, %v1893_v21 }
 0x194   :  { %v1931_v13 = vpop.f32.mrf.mxu0  ;;  %v1918_v30 = vpop.f32.mrf.mxu3 }
 0x195   :  { %v1919_v25 = vadd.f32 %v1918_v30, %v1906_v22 }
 0x197   :  { %v1932_v26 = vadd.f32 %v1931_v13, %v1919_v25 }
 0x19a   :  { %v1907_v16 = vpop.f32.mrf.mxu2 }
 0x19c   :  { %v1933_v19 = vpop.f32.mrf.mxu0  ;;  %v1920_v40 = vpop.f32.mrf.mxu3 }
 0x1a6   :  { %v1944_v23 = vpop.f32.mrf.mxu1 }
 0x1a7   :  { %v1945_v5 = vadd.f32 %v1944_v23, %v1932_v26 }
 0x1ae   :  { %v1946_v27 = vpop.f32.mrf.mxu1 }
 0x1b2   :  { %v1957_v28 = vpop.f32.mrf.mxu2 }
 0x1b3   :  { %v1958_v29 = vadd.f32 %v1957_v28, %v1945_v5 }
 0x1b5   :  { %v1964_v32 = vsel %vm1963_vm2, %v1958_v29, -inf }
 0x1b6   :  { %v1965_v33 = vmax.f32 %v1962_v4, %v1964_v32 }
 0x1b8   :  { %1966 = vmax.xlane.f32.xlu0 %v1965_v33 }
 0x1ba   :  { %v1959_v34 = vpop.f32.mrf.mxu2 }
 0x22b   :  { %v1967_v36 = vpop.xlane.xlu0 %1966 }
 0x22c   :  { %v1968_v47 = vsub.f32 %v1789_v57, %v1967_v36  ;;  %v1969_v37 = vsub.f32 %v1958_v29, %v1967_v36 }
 0x22e   :  { %v1970_v39 = vmul.f32 1.442695, %v1968_v47  ;;  %v1972_v38 = vmul.f32 1.442695, %v1969_v37 }
 0x230   :  { %3078 = vpow2.f32 %v1970_v39 }
 0x231   :  { %3080 = vpow2.f32 %v1972_v38 }
 0x236   :  { %v3079_v41 = vpop.eup %3078 }
 0x237   :  { %v3081_v42 = vpop.eup %3080  ;;  %v1974_v43 = vsel %vm1961_vm1, %v3079_v41, 0.0 }
 0x238   :  { %v1975_v55 = vsel %vm1963_vm2, %v3081_v42, 0.0 }
 0x239   :  { %v1976_v44 = vadd.f32 %v1975_v55, %v1974_v43 }
 0x23b   :  { %1977 = vadd.xlane.f32.xlu0 %v1976_v44 }
 0x2ae   :  { %v1978_v45 = vpop.xlane.xlu0 %1977 }
 0x2af   :  { %3082 = vrcp.f32 %v1978_v45  ;;  %v1990_v50 = vand.u32 2147483648, %v1978_v45  ;;  %v1988_v53 = vand.u32 2147483647, %v1978_v45  ;;  %vm1984_vm4 = vweird.f32 %v1978_v45 }
 0x2b1   :  { %v1991_v52 = vor.u32 1.1754944e-38, %v1990_v50  ;;  %vm1989_vm6 = vcmp.eq.f32.partialorder %v1988_v53, 8.507059e+37 }
 0x2b5   :  { %v3083_v46 = vpop.eup %3082 }
 0x2b6   :  { %v1980_v49 = vmul.f32 %v3083_v46, %v1978_v45  ;;  %vm1985_vm3 = vweird.f32 %v3083_v46 }
 0x2b7   :  { %vm1986_vm5 = vmor %vm1984_vm4, %vm1985_vm3 }
 0x2b8   :  { %v1981_v56 = vsub.f32 1.0, %v1980_v49 }
 0x2ba   :  { %v1982_v51 = vmul.f32 %v3083_v46, %v1981_v56 }
 0x2bc   :  { %v1983_v54 = vadd.f32 %v3083_v46, %v1982_v51 }
 0x2be   :  { %v1987_v57 = vsel %vm1986_vm5, %v3083_v46, %v1983_v54 }
 0x2bf   :  { %v1992_v48 = vsel %vm1989_vm6, %v1991_v52, %v1987_v57 }
 0x2c0   :  { %v1994_v58 = vmul.f32 %v3081_v42, %v1992_v48  ;;  %v1993_v59 = vmul.f32 %v3079_v41, %v1992_v48 }
 0x2c2   :  { %v1997_v60 = vrot.slane %v1994_v58, 6 }
 0x2c4   :  { %v1998_v61 = vsel %vm1961_vm1, %v1993_v59, %v1997_v60 }
 0x2c5   :  { %2002 = vst.msk [vmem:[#allocation2] sm:$0xf] %vm2001_vm8, %v1998_v61 }
 0x2c6   :  { %2013 = dma.vmem_to_hbm [thread:$0]  %s2009_s10, 64, %s2011_s13, [#allocation3]  }
 0x2c7   :  { %3108 = dma.done.wait [#allocation3], 64  }
 0x2c8   :  { %3109 = vsyncadd [#allocation3], 4294967232 }
 0x2c9   :  { %2018 = vsyncpa [#allocation3], 1 }

</bundles_post_ra>
